<compile_context>
chip_gen: v7x
topology: tpu7x:2x2x1
jax: 0.10.0
libtpu: 0.0.40
codegen_flags: <defaults>
</compile_context>

<pallas_src>
import functools
import math

import jax
import jax.numpy as jnp
from jax import lax
from jax.experimental import pallas as pl
from jax.experimental.pallas import tpu as pltpu


def _erf(x):
    """erf via Abramowitz & Stegun 7.1.26 (max abs error ~1.5e-7).

    Uses only exp / mul / add / abs / where so it lowers in Mosaic without
    relying on an erf primitive lowering."""
    a1, a2, a3, a4, a5 = (0.254829592, -0.284496736, 1.421413741,
                          -1.453152027, 1.061405429)
    p = 0.3275911
    sign = jnp.where(x >= 0.0, 1.0, -1.0)
    ax = jnp.abs(x)
    t = 1.0 / (1.0 + p * ax)
    poly = ((((a5 * t + a4) * t + a3) * t + a2) * t + a1) * t
    return sign * (1.0 - poly * jnp.exp(-(ax * ax)))


def _attention_residual_kernel(
    x_ref, mask_ref,
    wqkv_ref, bqkv_ref, wo_ref, bo_ref,
    ln_g_ref, ln_b_ref,
    w1_ref, b1_ref, w2_ref, b2_ref,
    out_ref, alphas_ref,
    qkv_scr, ctx_scr,
    *, S, H, Ap):
    """One grid step processes `Bt` batch elements (Bt*S rows at once)."""
    Bt = mask_ref.shape[0]
    HAp = H * Ap

    x_f32 = x_ref[...]                        # [Bt*S, D] f32 (kept for residual 1)
    x_bf = x_f32.astype(jnp.bfloat16)

    # ---- fused Q/K/V projection: ONE MXU matmul for all heads & tensors.
    # Per-head segments are padded to Ap lanes (pad cols / pad bias are zero);
    # the attention scale is already folded into the Q weights/bias.
    qkv_scr[...] = (
        jnp.dot(x_bf, wqkv_ref[...], preferred_element_type=jnp.float32)
        + bqkv_ref[...])                      # [Bt*S, 3*H*Ap] f32

    def batch_body(b, carry):
        row0 = pl.multiple_of(b * S, S)                       # sublane-aligned rows
        mask_b = mask_ref[b].astype(jnp.float32)              # [S, S], load/cast once per b

        # Static head loop: all lane slices below start at 128-lane multiples
        # and are full 128-wide lane tiles -> no XLU relayouts.
        for h in range(H):
            q = qkv_scr[pl.ds(row0, S), pl.ds(h * Ap, Ap)].astype(jnp.bfloat16)
            k = qkv_scr[pl.ds(row0, S), pl.ds(HAp + h * Ap, Ap)].astype(jnp.bfloat16)
            v = qkv_scr[pl.ds(row0, S), pl.ds(2 * HAp + h * Ap, Ap)].astype(jnp.bfloat16)

            # scores = (scale*q) @ k.T (bf16 operands, f32 accumulation on the MXU);
            # padded lanes are exactly zero so they contribute nothing.
            scores = lax.dot_general(q, k, (((1,), (1,)), ((), ())),
                                     preferred_element_type=jnp.float32)   # [S, S]
            scores = scores - jnp.max(scores, axis=-1, keepdims=True)
            e = jnp.exp(scores)
            denom = jnp.sum(e, axis=-1, keepdims=True)
            alpha = e * pl.reciprocal(denom, approx=True)     # EUP vrcp (not bit-exact)
            # PyTorch zeroes masked entries AFTER softmax, no renormalization;
            # for a 0/1 mask a single multiply == the compare+select.
            alpha = alpha * mask_b

            alphas_ref[b * H + h] = alpha

            ctx = jnp.dot(alpha.astype(jnp.bfloat16), v,
                          preferred_element_type=jnp.float32)              # [S, Ap]
            # 128-aligned, 128-wide store into the context slab (pad lanes are 0).
            ctx_scr[pl.ds(row0, S), pl.ds(h * Ap, Ap)] = ctx
        return carry

    lax.fori_loop(0, Bt, batch_body, 0, unroll=True)

    # ---- single output projection across all heads: [Bt*S, H*Ap] @ [H*Ap, D].
    # Padded wo rows are zero, so pad lanes of the context slab are harmless.
    attn = (jnp.dot(ctx_scr[...].astype(jnp.bfloat16), wo_ref[...],
                    preferred_element_type=jnp.float32) + bo_ref[...])      # [Bt*S, D]

    # ---- residual 1
    x1 = attn + x_f32

    # ---- FFN = LayerNorm -> Linear -> GELU(erf) -> Linear (f32 stats, bf16 matmuls)
    mean = jnp.mean(x1, axis=-1, keepdims=True)
    cent = x1 - mean
    var = jnp.mean(cent * cent, axis=-1, keepdims=True)
    xn = cent * lax.rsqrt(var + 1e-5)
    xn = xn * ln_g_ref[...] + ln_b_ref[...]

    h1 = jnp.dot(xn.astype(jnp.bfloat16), w1_ref[...],
                 preferred_element_type=jnp.float32) + b1_ref[...]
    # Exact-erf GELU (PyTorch's default nn.GELU()).
    g = 0.5 * h1 * (1.0 + _erf(h1 * (1.0 / math.sqrt(2.0))))
    ffn = jnp.dot(g.astype(jnp.bfloat16), w2_ref[...],
                  preferred_element_type=jnp.float32) + b2_ref[...]

    # ---- residual 2
    out_ref[...] = (ffn + x1).astype(out_ref.dtype)


def attention_residual(x, attn_mask, params, *, num_heads, batch_tile=None):
    B, S, D = x.shape
    H = num_heads
    A = params["wq"].shape[-1]            # attn_dim (per-head projection width)
    M = params["w1"].shape[-1]            # mlp_dim
    # Matches PyTorch: softmax(Q K^T / sqrt(n_hidden // num_heads)), n_hidden == attn_dim.
    scale = 1.0 / math.sqrt(A // H)

    # Pad each head's q/k/v segment (and the matching wo rows) to a 128-lane
    # multiple so every per-head lane slice in the kernel is tile-aligned.
    Ap = ((A + 127) // 128) * 128

    # Default batch tile: give the grid >= 2 "parallel" steps so both v7x
    # TensorCores get work; extra per-step overhead is negligible on v5e/v6e.
    if batch_tile is None:
        Bt = B // 2 if (B % 2 == 0 and B >= 2) else B
    else:
        Bt = batch_tile
    assert B % Bt == 0, "batch_tile must divide batch"

    f32, bf16 = jnp.float32, jnp.bfloat16

    def pack_heads_w(w):                  # [H, D, A] -> [D, H*Ap], zero-padded
        w_pad = jnp.pad(w, ((0, 0), (0, 0), (0, Ap - A)))
        return jnp.transpose(w_pad, (1, 0, 2)).reshape(D, H * Ap)

    def pack_heads_b(b):                  # [H, 1, A] -> [1, H*Ap], zero-padded
        b_pad = jnp.pad(b, ((0, 0), (0, 0), (0, Ap - A)))
        return jnp.transpose(b_pad, (1, 0, 2)).reshape(1, H * Ap)

    # Fold the attention scale into the Q projection (wrapper-side constant fold
    # on tiny weights, NOT an extra runtime op on activations).
    w_qkv = jnp.concatenate(
        [pack_heads_w(params["wq"] * scale),
         pack_heads_w(params["wk"]),
         pack_heads_w(params["wv"])], axis=1).astype(bf16)     # [D, 3*H*Ap]
    b_qkv = jnp.concatenate(
        [pack_heads_b(params["bq"] * scale),
         pack_heads_b(params["bk"]),
         pack_heads_b(params["bv"])], axis=1).astype(f32)      # [1, 3*H*Ap]

    wo_pad = jnp.pad(params["wo"].reshape(H, A, D),
                     ((0, 0), (0, Ap - A), (0, 0))).reshape(H * Ap, D).astype(bf16)
    bo = params["bo"].astype(f32)
    ln_g, ln_b = params["ln_g"].astype(f32), params["ln_b"].astype(f32)
    w1, b1 = params["w1"].astype(bf16), params["b1"].astype(f32)
    w2, b2 = params["w2"].astype(bf16), params["b2"].astype(f32)

    # 2-D row slab (free metadata reshape): QKV / output-proj / FFN matmuls span
    # all Bt*S rows with no in-kernel reshapes.
    x2d = x.reshape(B * S, D).astype(f32)
    mask_bf = attn_mask.astype(bf16)      # 0/1 mask: bf16 halves the mask DMA

    def full_spec(arr):
        zeros = (0,) * arr.ndim
        return pl.BlockSpec(arr.shape, lambda b, _z=zeros: _z)

    kernel = functools.partial(_attention_residual_kernel, S=S, H=H, Ap=Ap)

    in_specs = [
        pl.BlockSpec((Bt * S, D), lambda b: (b, 0)),     # x rows
        pl.BlockSpec((Bt, S, S), lambda b: (b, 0, 0)),   # mask
    ] + [full_spec(a) for a in
         (w_qkv, b_qkv, wo_pad, bo, ln_g, ln_b, w1, b1, w2, b2)]

    # alphas are emitted as a [B*H, S, S] slab (single leading dynamic index per
    # store) and reshaped to [B, H, S, S] in the wrapper.
    out_shapes = (
        jax.ShapeDtypeStruct((B * S, D), f32),
        jax.ShapeDtypeStruct((B * H, S, S), f32),
    )
    out_specs = (
        pl.BlockSpec((Bt * S, D), lambda b: (b, 0)),
        pl.BlockSpec((Bt * H, S, S), lambda b: (b, 0, 0)),
    )

    scratch_shapes = [
        pltpu.VMEM((Bt * S, 3 * H * Ap), f32),   # fused QKV slab
        pltpu.VMEM((Bt * S, H * Ap), f32),       # per-head context slab
    ]

    flops = int(2 * B * S * (D * 3 * H * Ap + 2 * H * S * Ap + H * Ap * D + 2 * D * M))
    transcendentals = int(B * S * (H * S + M + H))
    bytes_accessed = int(4 * B * S * (2 * D) + 2 * B * S * S + 4 * B * H * S * S
                         + 2 * (D * 3 * H * Ap + H * Ap * D + 2 * D * M)
                         + 4 * (3 * H * Ap + 2 * D + M + D))

    out2d, alphas_flat = pl.pallas_call(
        kernel,
        out_shape=out_shapes,
        grid=(B // Bt,),
        in_specs=in_specs,
        out_specs=out_specs,
        scratch_shapes=scratch_shapes,
        compiler_params=pltpu.CompilerParams(
            dimension_semantics=("parallel",),
            # Plenty for toy shapes. For real shapes: raise toward ~96 MiB on
            # v5e/v6e (128 MiB physical), cap ~48-56 MiB on v7x (64 MiB).
            vmem_limit_bytes=32 * 1024 * 1024),
        cost_estimate=pl.CostEstimate(
            flops=flops, transcendentals=transcendentals,
            bytes_accessed=bytes_accessed),
    )(x2d, mask_bf, w_qkv, b_qkv, wo_pad, bo, ln_g, ln_b, w1, b1, w2, b2)

    # TODO(synk): for non-toy S, add a query-tile grid axis ("arbitrary") with
    # K/V computed once per batch step under pl.when(q_idx == 0), sized so the
    # resident Bt*H*Tq*S alphas block fits v7x's 64 MiB VMEM (v5e/v6e tolerate
    # ~2x larger tiles); optionally cast the FFN weights to fp8 on v7x.
    return out2d.reshape(B, S, D), alphas_flat.reshape(B, H, S, S)


def init_params(key, dim, attn_dim, mlp_dim, num_heads):
    """Deterministic synthetic parameters (shapes match the PyTorch module).
    Linear weights are stored pre-transposed: [in, out], so y = x @ W + b."""
    ks = jax.random.split(key, 16)
    s = 0.05
    p = {
        # per-head projections, stacked on axis 0: [H, D, A]; biases [H, 1, A]
        "wq": jax.random.normal(ks[0], (num_heads, dim, attn_dim), jnp.float32) * s,
        "bq": jax.random.normal(ks[1], (num_heads, 1, attn_dim), jnp.float32) * s,
        "wk": jax.random.normal(ks[2], (num_heads, dim, attn_dim), jnp.float32) * s,
        "bk": jax.random.normal(ks[3], (num_heads, 1, attn_dim), jnp.float32) * s,
        "wv": jax.random.normal(ks[4], (num_heads, dim, attn_dim), jnp.float32) * s,
        "bv": jax.random.normal(ks[5], (num_heads, 1, attn_dim), jnp.float32) * s,
        # output projection: [H*A, D]
        "wo": jax.random.normal(ks[6], (num_heads * attn_dim, dim), jnp.float32) * s,
        "bo": jax.random.normal(ks[7], (1, dim), jnp.float32) * s,
        # FFN LayerNorm
        "ln_g": jnp.ones((1, dim), jnp.float32),
        "ln_b": jnp.zeros((1, dim), jnp.float32),
        # FFN linears
        "w1": jax.random.normal(ks[8], (dim, mlp_dim), jnp.float32) * s,
        "b1": jax.random.normal(ks[9], (1, mlp_dim), jnp.float32) * s,
        "w2": jax.random.normal(ks[10], (mlp_dim, dim), jnp.float32) * s,
        "b2": jax.random.normal(ks[11], (1, dim), jnp.float32) * s,
    }
    return p


if __name__ == "__main__":
    # Small shapes consistent with the module's forward:
    # x: [batch=2, seq=8, dim=32]; attn_mask: [2, 8, 8]
    B, S, D = 2, 8, 32
    ATTN_DIM, MLP_DIM, HEADS = 16, 64, 4

    key = jax.random.PRNGKey(0)
    kx, km, kp = jax.random.split(key, 3)

    x = jax.random.normal(kx, (B, S, D), jnp.float32)
    # Binary mask with ~80% kept entries (1 = keep, 0 = zero post-softmax weight)
    attn_mask = (jax.random.uniform(km, (B, S, S)) > 0.2).astype(jnp.float32)

    params = init_params(kp, D, ATTN_DIM, MLP_DIM, HEADS)

    out, alphas = attention_residual(x, attn_mask, params, num_heads=HEADS)
    out = jax.block_until_ready(out)
    alphas = jax.block_until_ready(alphas)

    assert out.shape == (B, S, D)
    assert alphas.shape == (B, HEADS, S, S)
    assert bool(jnp.all(jnp.isfinite(out))) and bool(jnp.all(jnp.isfinite(alphas)))
    print("KERNEL_OK")
</pallas_src>

<mosaic_0001>
module attributes {stable_mosaic.version = 11 : i64} {
  func.func @_attention_residual_kernel(%arg0: i32, %arg1: memref<8x32xf32, #tpu.memory_space<vmem>>, %arg2: memref<1x8x8xbf16, #tpu.memory_space<vmem>>, %arg3: memref<32x1536xbf16, #tpu.memory_space<vmem>>, %arg4: memref<1x1536xf32, #tpu.memory_space<vmem>>, %arg5: memref<512x32xbf16, #tpu.memory_space<vmem>>, %arg6: memref<1x32xf32, #tpu.memory_space<vmem>>, %arg7: memref<1x32xf32, #tpu.memory_space<vmem>>, %arg8: memref<1x32xf32, #tpu.memory_space<vmem>>, %arg9: memref<32x64xbf16, #tpu.memory_space<vmem>>, %arg10: memref<1x64xf32, #tpu.memory_space<vmem>>, %arg11: memref<64x32xbf16, #tpu.memory_space<vmem>>, %arg12: memref<1x32xf32, #tpu.memory_space<vmem>>, %arg13: memref<8x32xf32, #tpu.memory_space<vmem>>, %arg14: memref<4x8x8xf32, #tpu.memory_space<vmem>>, %arg15: memref<8x1536xf32, #tpu.memory_space<vmem>>, %arg16: memref<8x512xf32, #tpu.memory_space<vmem>>) attributes {dimension_semantics = [#tpu.dimension_semantics<parallel>], iteration_bounds = array<i64: 2>, scalar_prefetch = 0 : i64, scratch_operands = 2 : i64, tpu.core_type = #tpu.core_type<tc>, window_params = [{transform_indices = @transform_0, window_bounds = array<i64: 8, 32>}, {transform_indices = @transform_1, window_bounds = array<i64: 1, 8, 8>}, {pipeline_mode = #tpu.pipeline_mode<synchronous>, transform_indices = @transform_2, window_bounds = array<i64: 32, 1536>}, {pipeline_mode = #tpu.pipeline_mode<synchronous>, transform_indices = @transform_3, window_bounds = array<i64: 1, 1536>}, {pipeline_mode = #tpu.pipeline_mode<synchronous>, transform_indices = @transform_4, window_bounds = array<i64: 512, 32>}, {pipeline_mode = #tpu.pipeline_mode<synchronous>, transform_indices = @transform_5, window_bounds = array<i64: 1, 32>}, {pipeline_mode = #tpu.pipeline_mode<synchronous>, transform_indices = @transform_6, window_bounds = array<i64: 1, 32>}, {pipeline_mode = #tpu.pipeline_mode<synchronous>, transform_indices = @transform_7, window_bounds = array<i64: 1, 32>}, {pipeline_mode = #tpu.pipeline_mode<synchronous>, transform_indices = @transform_8, window_bounds = array<i64: 32, 64>}, {pipeline_mode = #tpu.pipeline_mode<synchronous>, transform_indices = @transform_9, window_bounds = array<i64: 1, 64>}, {pipeline_mode = #tpu.pipeline_mode<synchronous>, transform_indices = @transform_10, window_bounds = array<i64: 64, 32>}, {pipeline_mode = #tpu.pipeline_mode<synchronous>, transform_indices = @transform_11, window_bounds = array<i64: 1, 32>}, {transform_indices = @transform_12, window_bounds = array<i64: 8, 32>}, {transform_indices = @transform_13, window_bounds = array<i64: 4, 8, 8>}]} {
    %c0 = arith.constant 0 : index
    %c0_0 = arith.constant 0 : index
    %0 = vector.load %arg1[%c0, %c0_0] : memref<8x32xf32, #tpu.memory_space<vmem>>, vector<8x32xf32>
    %1 = arith.truncf %0 : vector<8x32xf32> to vector<8x32xbf16>
    %c0_1 = arith.constant 0 : index
    %c0_2 = arith.constant 0 : index
    %2 = vector.load %arg3[%c0_1, %c0_2] : memref<32x1536xbf16, #tpu.memory_space<vmem>>, vector<32x1536xbf16>
    %cst = arith.constant dense<0.000000e+00> : vector<8x1536xf32>
    %3 = tpu.matmul %1, %2, %cst {dimension_numbers = #tpu.dot_dimension_numbers<[1], [0], [0], [1], [0, 0, 1, 1], [], []>} : vector<8x32xbf16>, vector<32x1536xbf16>, vector<8x1536xf32> -> vector<8x1536xf32>
    %c0_3 = arith.constant 0 : index
    %c0_4 = arith.constant 0 : index
    %4 = vector.load %arg4[%c0_3, %c0_4] : memref<1x1536xf32, #tpu.memory_space<vmem>>, vector<1x1536xf32>
    %5 = vector.broadcast %4 : vector<1x1536xf32> to vector<8x1536xf32>
    %6 = arith.addf %3, %5 : vector<8x1536xf32>
    %c0_5 = arith.constant 0 : index
    %c0_6 = arith.constant 0 : index
    %7 = vector.load %arg15[%c0_5, %c0_6] : memref<8x1536xf32, #tpu.memory_space<vmem>>, vector<8x1536xf32>
    tpu.vector_store %arg15[%c0_5, %c0_6], %6 {strides = array<i32>} : memref<8x1536xf32, #tpu.memory_space<vmem>>, vector<8x1536xf32>,
    %c0_i32 = arith.constant 0 : i32
    %c8_i32 = arith.constant 8 : i32
    %8 = arith.muli %c0_i32, %c8_i32 : i32
    %9 = tpu.assume_multiple %8, 8 : i32
    %10 = arith.index_cast %c0_i32 : i32 to index
    %c0_7 = arith.constant 0 : index
    %c0_8 = arith.constant 0 : index
    %11 = vector.load %arg2[%10, %c0_7, %c0_8] : memref<1x8x8xbf16, #tpu.memory_space<vmem>>, vector<1x8x8xbf16>
    %12 = vector.shape_cast %11 : vector<1x8x8xbf16> to vector<8x8xbf16>
    %13 = arith.extf %12 : vector<8x8xbf16> to vector<8x8xf32>
    %14 = arith.index_cast %9 : i32 to index
    %c0_9 = arith.constant 0 : index
    %15 = vector.load %arg15[%14, %c0_9] : memref<8x1536xf32, #tpu.memory_space<vmem>>, vector<8x128xf32>
    %16 = arith.truncf %15 : vector<8x128xf32> to vector<8x128xbf16>
    %17 = arith.index_cast %9 : i32 to index
    %c512 = arith.constant 512 : index
    %18 = vector.load %arg15[%17, %c512] : memref<8x1536xf32, #tpu.memory_space<vmem>>, vector<8x128xf32>
    %19 = arith.truncf %18 : vector<8x128xf32> to vector<8x128xbf16>
    %20 = arith.index_cast %9 : i32 to index
    %c1024 = arith.constant 1024 : index
    %21 = vector.load %arg15[%20, %c1024] : memref<8x1536xf32, #tpu.memory_space<vmem>>, vector<8x128xf32>
    %22 = arith.truncf %21 : vector<8x128xf32> to vector<8x128xbf16>
    %cst_10 = arith.constant dense<0.000000e+00> : vector<8x8xf32>
    %23 = tpu.matmul %16, %19, %cst_10 {dimension_numbers = #tpu.dot_dimension_numbers<[1], [1], [0], [0], [0, 0, 1, 0], [], []>} : vector<8x128xbf16>, vector<8x128xbf16>, vector<8x8xf32> -> vector<8x8xf32>
    %cst_11 = arith.constant dense<0xFF800000> : vector<8xf32>
    %24 = vector.multi_reduction <maximumf>, %23, %cst_11 [1] : vector<8x8xf32> to vector<8xf32>
    %25 = vector.shape_cast %24 : vector<8xf32> to vector<8x1xf32>
    %26 = vector.broadcast %25 : vector<8x1xf32> to vector<8x8xf32>
    %27 = arith.subf %23, %26 : vector<8x8xf32>
    %28 = math.exp %27 : vector<8x8xf32>
    %cst_12 = arith.constant dense<0.000000e+00> : vector<8xf32>
    %29 = vector.multi_reduction <add>, %28, %cst_12 [1] : vector<8x8xf32> to vector<8xf32>
    %30 = vector.shape_cast %29 : vector<8xf32> to vector<8x1xf32>
    %31 = tpu.reciprocal %30 {approx = true} : vector<8x1xf32> -> vector<8x1xf32>
    %32 = vector.broadcast %31 : vector<8x1xf32> to vector<8x8xf32>
    %33 = arith.mulf %28, %32 : vector<8x8xf32>
    %34 = arith.mulf %33, %13 : vector<8x8xf32>
    %c4_i32 = arith.constant 4 : i32
    %35 = arith.muli %c0_i32, %c4_i32 : i32
    %c0_i32_13 = arith.constant 0 : i32
    %36 = arith.addi %35, %c0_i32_13 : i32
    %37 = arith.index_cast %36 : i32 to index
    %c0_14 = arith.constant 0 : index
    %c0_15 = arith.constant 0 : index
    %38 = vector.load %arg14[%37, %c0_14, %c0_15] : memref<4x8x8xf32, #tpu.memory_space<vmem>>, vector<1x8x8xf32>
    %39 = vector.shape_cast %38 : vector<1x8x8xf32> to vector<8x8xf32>
    %40 = vector.shape_cast %34 : vector<8x8xf32> to vector<1x8x8xf32>
    tpu.vector_store %arg14[%37, %c0_14, %c0_15], %40 {strides = array<i32>} : memref<4x8x8xf32, #tpu.memory_space<vmem>>, vector<1x8x8xf32>,
    %41 = arith.truncf %34 : vector<8x8xf32> to vector<8x8xbf16>
    %cst_16 = arith.constant dense<0.000000e+00> : vector<8x128xf32>
    %42 = tpu.matmul %41, %22, %cst_16 {dimension_numbers = #tpu.dot_dimension_numbers<[1], [0], [0], [1], [0, 0, 1, 1], [], []>} : vector<8x8xbf16>, vector<8x128xbf16>, vector<8x128xf32> -> vector<8x128xf32>
    %43 = arith.index_cast %9 : i32 to index
    %c0_17 = arith.constant 0 : index
    %44 = vector.load %arg16[%43, %c0_17] : memref<8x512xf32, #tpu.memory_space<vmem>>, vector<8x128xf32>
    tpu.vector_store %arg16[%43, %c0_17], %42 {strides = array<i32>} : memref<8x512xf32, #tpu.memory_space<vmem>>, vector<8x128xf32>,
    %45 = arith.index_cast %9 : i32 to index
    %c128 = arith.constant 128 : index
    %46 = vector.load %arg15[%45, %c128] : memref<8x1536xf32, #tpu.memory_space<vmem>>, vector<8x128xf32>
    %47 = arith.truncf %46 : vector<8x128xf32> to vector<8x128xbf16>
    %48 = arith.index_cast %9 : i32 to index
    %c640 = arith.constant 640 : index
    %49 = vector.load %arg15[%48, %c640] : memref<8x1536xf32, #tpu.memory_space<vmem>>, vector<8x128xf32>
    %50 = arith.truncf %49 : vector<8x128xf32> to vector<8x128xbf16>
    %51 = arith.index_cast %9 : i32 to index
    %c1152 = arith.constant 1152 : index
    %52 = vector.load %arg15[%51, %c1152] : memref<8x1536xf32, #tpu.memory_space<vmem>>, vector<8x128xf32>
    %53 = arith.truncf %52 : vector<8x128xf32> to vector<8x128xbf16>
    %cst_18 = arith.constant dense<0.000000e+00> : vector<8x8xf32>
    %54 = tpu.matmul %47, %50, %cst_18 {dimension_numbers = #tpu.dot_dimension_numbers<[1], [1], [0], [0], [0, 0, 1, 0], [], []>} : vector<8x128xbf16>, vector<8x128xbf16>, vector<8x8xf32> -> vector<8x8xf32>
    %cst_19 = arith.constant dense<0xFF800000> : vector<8xf32>
    %55 = vector.multi_reduction <maximumf>, %54, %cst_19 [1] : vector<8x8xf32> to vector<8xf32>
    %56 = vector.shape_cast %55 : vector<8xf32> to vector<8x1xf32>
    %57 = vector.broadcast %56 : vector<8x1xf32> to vector<8x8xf32>
    %58 = arith.subf %54, %57 : vector<8x8xf32>
    %59 = math.exp %58 : vector<8x8xf32>
    %cst_20 = arith.constant dense<0.000000e+00> : vector<8xf32>
    %60 = vector.multi_reduction <add>, %59, %cst_20 [1] : vector<8x8xf32> to vector<8xf32>
    %61 = vector.shape_cast %60 : vector<8xf32> to vector<8x1xf32>
    %62 = tpu.reciprocal %61 {approx = true} : vector<8x1xf32> -> vector<8x1xf32>
    %63 = vector.broadcast %62 : vector<8x1xf32> to vector<8x8xf32>
    %64 = arith.mulf %59, %63 : vector<8x8xf32>
    %65 = arith.mulf %64, %13 : vector<8x8xf32>
    %c4_i32_21 = arith.constant 4 : i32
    %66 = arith.muli %c0_i32, %c4_i32_21 : i32
    %c1_i32 = arith.constant 1 : i32
    %67 = arith.addi %66, %c1_i32 : i32
    %68 = arith.index_cast %67 : i32 to index
    %c0_22 = arith.constant 0 : index
    %c0_23 = arith.constant 0 : index
    %69 = vector.load %arg14[%68, %c0_22, %c0_23] : memref<4x8x8xf32, #tpu.memory_space<vmem>>, vector<1x8x8xf32>
    %70 = vector.shape_cast %69 : vector<1x8x8xf32> to vector<8x8xf32>
    %71 = vector.shape_cast %65 : vector<8x8xf32> to vector<1x8x8xf32>
    tpu.vector_store %arg14[%68, %c0_22, %c0_23], %71 {strides = array<i32>} : memref<4x8x8xf32, #tpu.memory_space<vmem>>, vector<1x8x8xf32>,
    %72 = arith.truncf %65 : vector<8x8xf32> to vector<8x8xbf16>
    %cst_24 = arith.constant dense<0.000000e+00> : vector<8x128xf32>
    %73 = tpu.matmul %72, %53, %cst_24 {dimension_numbers = #tpu.dot_dimension_numbers<[1], [0], [0], [1], [0, 0, 1, 1], [], []>} : vector<8x8xbf16>, vector<8x128xbf16>, vector<8x128xf32> -> vector<8x128xf32>
    %74 = arith.index_cast %9 : i32 to index
    %c128_25 = arith.constant 128 : index
    %75 = vector.load %arg16[%74, %c128_25] : memref<8x512xf32, #tpu.memory_space<vmem>>, vector<8x128xf32>
    tpu.vector_store %arg16[%74, %c128_25], %73 {strides = array<i32>} : memref<8x512xf32, #tpu.memory_space<vmem>>, vector<8x128xf32>,
    %76 = arith.index_cast %9 : i32 to index
    %c256 = arith.constant 256 : index
    %77 = vector.load %arg15[%76, %c256] : memref<8x1536xf32, #tpu.memory_space<vmem>>, vector<8x128xf32>
    %78 = arith.truncf %77 : vector<8x128xf32> to vector<8x128xbf16>
    %79 = arith.index_cast %9 : i32 to index
    %c768 = arith.constant 768 : index
    %80 = vector.load %arg15[%79, %c768] : memref<8x1536xf32, #tpu.memory_space<vmem>>, vector<8x128xf32>
    %81 = arith.truncf %80 : vector<8x128xf32> to vector<8x128xbf16>
    %82 = arith.index_cast %9 : i32 to index
    %c1280 = arith.constant 1280 : index
    %83 = vector.load %arg15[%82, %c1280] : memref<8x1536xf32, #tpu.memory_space<vmem>>, vector<8x128xf32>
    %84 = arith.truncf %83 : vector<8x128xf32> to vector<8x128xbf16>
    %cst_26 = arith.constant dense<0.000000e+00> : vector<8x8xf32>
    %85 = tpu.matmul %78, %81, %cst_26 {dimension_numbers = #tpu.dot_dimension_numbers<[1], [1], [0], [0], [0, 0, 1, 0], [], []>} : vector<8x128xbf16>, vector<8x128xbf16>, vector<8x8xf32> -> vector<8x8xf32>
    %cst_27 = arith.constant dense<0xFF800000> : vector<8xf32>
    %86 = vector.multi_reduction <maximumf>, %85, %cst_27 [1] : vector<8x8xf32> to vector<8xf32>
    %87 = vector.shape_cast %86 : vector<8xf32> to vector<8x1xf32>
    %88 = vector.broadcast %87 : vector<8x1xf32> to vector<8x8xf32>
    %89 = arith.subf %85, %88 : vector<8x8xf32>
    %90 = math.exp %89 : vector<8x8xf32>
    %cst_28 = arith.constant dense<0.000000e+00> : vector<8xf32>
    %91 = vector.multi_reduction <add>, %90, %cst_28 [1] : vector<8x8xf32> to vector<8xf32>
    %92 = vector.shape_cast %91 : vector<8xf32> to vector<8x1xf32>
    %93 = tpu.reciprocal %92 {approx = true} : vector<8x1xf32> -> vector<8x1xf32>
    %94 = vector.broadcast %93 : vector<8x1xf32> to vector<8x8xf32>
    %95 = arith.mulf %90, %94 : vector<8x8xf32>
    %96 = arith.mulf %95, %13 : vector<8x8xf32>
    %c4_i32_29 = arith.constant 4 : i32
    %97 = arith.muli %c0_i32, %c4_i32_29 : i32
    %c2_i32 = arith.constant 2 : i32
    %98 = arith.addi %97, %c2_i32 : i32
    %99 = arith.index_cast %98 : i32 to index
    %c0_30 = arith.constant 0 : index
    %c0_31 = arith.constant 0 : index
    %100 = vector.load %arg14[%99, %c0_30, %c0_31] : memref<4x8x8xf32, #tpu.memory_space<vmem>>, vector<1x8x8xf32>
    %101 = vector.shape_cast %100 : vector<1x8x8xf32> to vector<8x8xf32>
    %102 = vector.shape_cast %96 : vector<8x8xf32> to vector<1x8x8xf32>
    tpu.vector_store %arg14[%99, %c0_30, %c0_31], %102 {strides = array<i32>} : memref<4x8x8xf32, #tpu.memory_space<vmem>>, vector<1x8x8xf32>,
    %103 = arith.truncf %96 : vector<8x8xf32> to vector<8x8xbf16>
    %cst_32 = arith.constant dense<0.000000e+00> : vector<8x128xf32>
    %104 = tpu.matmul %103, %84, %cst_32 {dimension_numbers = #tpu.dot_dimension_numbers<[1], [0], [0], [1], [0, 0, 1, 1], [], []>} : vector<8x8xbf16>, vector<8x128xbf16>, vector<8x128xf32> -> vector<8x128xf32>
    %105 = arith.index_cast %9 : i32 to index
    %c256_33 = arith.constant 256 : index
    %106 = vector.load %arg16[%105, %c256_33] : memref<8x512xf32, #tpu.memory_space<vmem>>, vector<8x128xf32>
    tpu.vector_store %arg16[%105, %c256_33], %104 {strides = array<i32>} : memref<8x512xf32, #tpu.memory_space<vmem>>, vector<8x128xf32>,
    %107 = arith.index_cast %9 : i32 to index
    %c384 = arith.constant 384 : index
    %108 = vector.load %arg15[%107, %c384] : memref<8x1536xf32, #tpu.memory_space<vmem>>, vector<8x128xf32>
    %109 = arith.truncf %108 : vector<8x128xf32> to vector<8x128xbf16>
    %110 = arith.index_cast %9 : i32 to index
    %c896 = arith.constant 896 : index
    %111 = vector.load %arg15[%110, %c896] : memref<8x1536xf32, #tpu.memory_space<vmem>>, vector<8x128xf32>
    %112 = arith.truncf %111 : vector<8x128xf32> to vector<8x128xbf16>
    %113 = arith.index_cast %9 : i32 to index
    %c1408 = arith.constant 1408 : index
    %114 = vector.load %arg15[%113, %c1408] : memref<8x1536xf32, #tpu.memory_space<vmem>>, vector<8x128xf32>
    %115 = arith.truncf %114 : vector<8x128xf32> to vector<8x128xbf16>
    %cst_34 = arith.constant dense<0.000000e+00> : vector<8x8xf32>
    %116 = tpu.matmul %109, %112, %cst_34 {dimension_numbers = #tpu.dot_dimension_numbers<[1], [1], [0], [0], [0, 0, 1, 0], [], []>} : vector<8x128xbf16>, vector<8x128xbf16>, vector<8x8xf32> -> vector<8x8xf32>
    %cst_35 = arith.constant dense<0xFF800000> : vector<8xf32>
    %117 = vector.multi_reduction <maximumf>, %116, %cst_35 [1] : vector<8x8xf32> to vector<8xf32>
    %118 = vector.shape_cast %117 : vector<8xf32> to vector<8x1xf32>
    %119 = vector.broadcast %118 : vector<8x1xf32> to vector<8x8xf32>
    %120 = arith.subf %116, %119 : vector<8x8xf32>
    %121 = math.exp %120 : vector<8x8xf32>
    %cst_36 = arith.constant dense<0.000000e+00> : vector<8xf32>
    %122 = vector.multi_reduction <add>, %121, %cst_36 [1] : vector<8x8xf32> to vector<8xf32>
    %123 = vector.shape_cast %122 : vector<8xf32> to vector<8x1xf32>
    %124 = tpu.reciprocal %123 {approx = true} : vector<8x1xf32> -> vector<8x1xf32>
    %125 = vector.broadcast %124 : vector<8x1xf32> to vector<8x8xf32>
    %126 = arith.mulf %121, %125 : vector<8x8xf32>
    %127 = arith.mulf %126, %13 : vector<8x8xf32>
    %c4_i32_37 = arith.constant 4 : i32
    %128 = arith.muli %c0_i32, %c4_i32_37 : i32
    %c3_i32 = arith.constant 3 : i32
    %129 = arith.addi %128, %c3_i32 : i32
    %130 = arith.index_cast %129 : i32 to index
    %c0_38 = arith.constant 0 : index
    %c0_39 = arith.constant 0 : index
    %131 = vector.load %arg14[%130, %c0_38, %c0_39] : memref<4x8x8xf32, #tpu.memory_space<vmem>>, vector<1x8x8xf32>
    %132 = vector.shape_cast %131 : vector<1x8x8xf32> to vector<8x8xf32>
    %133 = vector.shape_cast %127 : vector<8x8xf32> to vector<1x8x8xf32>
    tpu.vector_store %arg14[%130, %c0_38, %c0_39], %133 {strides = array<i32>} : memref<4x8x8xf32, #tpu.memory_space<vmem>>, vector<1x8x8xf32>,
    %134 = arith.truncf %127 : vector<8x8xf32> to vector<8x8xbf16>
    %cst_40 = arith.constant dense<0.000000e+00> : vector<8x128xf32>
    %135 = tpu.matmul %134, %115, %cst_40 {dimension_numbers = #tpu.dot_dimension_numbers<[1], [0], [0], [1], [0, 0, 1, 1], [], []>} : vector<8x8xbf16>, vector<8x128xbf16>, vector<8x128xf32> -> vector<8x128xf32>
    %136 = arith.index_cast %9 : i32 to index
    %c384_41 = arith.constant 384 : index
    %137 = vector.load %arg16[%136, %c384_41] : memref<8x512xf32, #tpu.memory_space<vmem>>, vector<8x128xf32>
    tpu.vector_store %arg16[%136, %c384_41], %135 {strides = array<i32>} : memref<8x512xf32, #tpu.memory_space<vmem>>, vector<8x128xf32>,
    %c1_i32_42 = arith.constant 1 : i32
    %c0_43 = arith.constant 0 : index
    %c0_44 = arith.constant 0 : index
    %138 = vector.load %arg16[%c0_43, %c0_44] : memref<8x512xf32, #tpu.memory_space<vmem>>, vector<8x512xf32>
    %139 = arith.truncf %138 : vector<8x512xf32> to vector<8x512xbf16>
    %c0_45 = arith.constant 0 : index
    %c0_46 = arith.constant 0 : index
    %140 = vector.load %arg5[%c0_45, %c0_46] : memref<512x32xbf16, #tpu.memory_space<vmem>>, vector<512x32xbf16>
    %cst_47 = arith.constant dense<0.000000e+00> : vector<8x32xf32>
    %141 = tpu.matmul %139, %140, %cst_47 {dimension_numbers = #tpu.dot_dimension_numbers<[1], [0], [0], [1], [0, 0, 1, 1], [], []>} : vector<8x512xbf16>, vector<512x32xbf16>, vector<8x32xf32> -> vector<8x32xf32>
    %c0_48 = arith.constant 0 : index
    %c0_49 = arith.constant 0 : index
    %142 = vector.load %arg6[%c0_48, %c0_49] : memref<1x32xf32, #tpu.memory_space<vmem>>, vector<1x32xf32>
    %143 = vector.broadcast %142 : vector<1x32xf32> to vector<8x32xf32>
    %144 = arith.addf %141, %143 : vector<8x32xf32>
    %145 = arith.addf %144, %0 : vector<8x32xf32>
    %cst_50 = arith.constant dense<0.000000e+00> : vector<8xf32>
    %146 = vector.multi_reduction <add>, %145, %cst_50 [1] : vector<8x32xf32> to vector<8xf32>
    %147 = vector.shape_cast %146 : vector<8xf32> to vector<8x1xf32>
    %cst_51 = arith.constant 3.200000e+01 : f32
    %148 = vector.broadcast %cst_51 : f32 to vector<8x1xf32>
    %149 = arith.divf %147, %148 : vector<8x1xf32>
    %150 = vector.broadcast %149 : vector<8x1xf32> to vector<8x32xf32>
    %151 = arith.subf %145, %150 : vector<8x32xf32>
    %152 = arith.mulf %151, %151 : vector<8x32xf32>
    %cst_52 = arith.constant dense<0.000000e+00> : vector<8xf32>
    %153 = vector.multi_reduction <add>, %152, %cst_52 [1] : vector<8x32xf32> to vector<8xf32>
    %154 = vector.shape_cast %153 : vector<8xf32> to vector<8x1xf32>
    %cst_53 = arith.constant 3.200000e+01 : f32
    %155 = vector.broadcast %cst_53 : f32 to vector<8x1xf32>
    %156 = arith.divf %154, %155 : vector<8x1xf32>
    %cst_54 = arith.constant 9.99999974E-6 : f32
    %157 = vector.broadcast %cst_54 : f32 to vector<8x1xf32>
    %158 = arith.addf %156, %157 : vector<8x1xf32>
    %159 = math.rsqrt %158 : vector<8x1xf32>
    %160 = vector.broadcast %159 : vector<8x1xf32> to vector<8x32xf32>
    %161 = arith.mulf %151, %160 : vector<8x32xf32>
    %c0_55 = arith.constant 0 : index
    %c0_56 = arith.constant 0 : index
    %162 = vector.load %arg7[%c0_55, %c0_56] : memref<1x32xf32, #tpu.memory_space<vmem>>, vector<1x32xf32>
    %163 = vector.broadcast %162 : vector<1x32xf32> to vector<8x32xf32>
    %164 = arith.mulf %161, %163 : vector<8x32xf32>
    %c0_57 = arith.constant 0 : index
    %c0_58 = arith.constant 0 : index
    %165 = vector.load %arg8[%c0_57, %c0_58] : memref<1x32xf32, #tpu.memory_space<vmem>>, vector<1x32xf32>
    %166 = vector.broadcast %165 : vector<1x32xf32> to vector<8x32xf32>
    %167 = arith.addf %164, %166 : vector<8x32xf32>
    %168 = arith.truncf %167 : vector<8x32xf32> to vector<8x32xbf16>
    %c0_59 = arith.constant 0 : index
    %c0_60 = arith.constant 0 : index
    %169 = vector.load %arg9[%c0_59, %c0_60] : memref<32x64xbf16, #tpu.memory_space<vmem>>, vector<32x64xbf16>
    %cst_61 = arith.constant dense<0.000000e+00> : vector<8x64xf32>
    %170 = tpu.matmul %168, %169, %cst_61 {dimension_numbers = #tpu.dot_dimension_numbers<[1], [0], [0], [1], [0, 0, 1, 1], [], []>} : vector<8x32xbf16>, vector<32x64xbf16>, vector<8x64xf32> -> vector<8x64xf32>
    %c0_62 = arith.constant 0 : index
    %c0_63 = arith.constant 0 : index
    %171 = vector.load %arg10[%c0_62, %c0_63] : memref<1x64xf32, #tpu.memory_space<vmem>>, vector<1x64xf32>
    %172 = vector.broadcast %171 : vector<1x64xf32> to vector<8x64xf32>
    %173 = arith.addf %170, %172 : vector<8x64xf32>
    %cst_64 = arith.constant 5.000000e-01 : f32
    %174 = vector.broadcast %cst_64 : f32 to vector<8x64xf32>
    %175 = arith.mulf %174, %173 : vector<8x64xf32>
    %cst_65 = arith.constant 0.707106769 : f32
    %176 = vector.broadcast %cst_65 : f32 to vector<8x64xf32>
    %177 = arith.mulf %173, %176 : vector<8x64xf32>
    %cst_66 = arith.constant 0.000000e+00 : f32
    %178 = vector.broadcast %cst_66 : f32 to vector<8x64xf32>
    %179 = arith.cmpf oge, %177, %178 : vector<8x64xf32>
    %cst_67 = arith.constant 1.000000e+00 : f32
    %cst_68 = arith.constant -1.000000e+00 : f32
    %180 = vector.broadcast %cst_67 : f32 to vector<8x64xf32>
    %181 = vector.broadcast %cst_68 : f32 to vector<8x64xf32>
    %182 = arith.select %179, %180, %181 : vector<8x64xi1>, vector<8x64xf32>
    %183 = math.absf %177 : vector<8x64xf32>
    %cst_69 = arith.constant 0.327591091 : f32
    %184 = vector.broadcast %cst_69 : f32 to vector<8x64xf32>
    %185 = arith.mulf %184, %183 : vector<8x64xf32>
    %cst_70 = arith.constant 1.000000e+00 : f32
    %186 = vector.broadcast %cst_70 : f32 to vector<8x64xf32>
    %187 = arith.addf %186, %185 : vector<8x64xf32>
    %cst_71 = arith.constant 1.000000e+00 : f32
    %188 = vector.broadcast %cst_71 : f32 to vector<8x64xf32>
    %189 = arith.divf %188, %187 : vector<8x64xf32>
    %cst_72 = arith.constant 1.06140542 : f32
    %190 = vector.broadcast %cst_72 : f32 to vector<8x64xf32>
    %191 = arith.mulf %190, %189 : vector<8x64xf32>
    %cst_73 = arith.constant -1.45315206 : f32
    %192 = vector.broadcast %cst_73 : f32 to vector<8x64xf32>
    %193 = arith.addf %191, %192 : vector<8x64xf32>
    %194 = arith.mulf %193, %189 : vector<8x64xf32>
    %cst_74 = arith.constant 1.42141378 : f32
    %195 = vector.broadcast %cst_74 : f32 to vector<8x64xf32>
    %196 = arith.addf %194, %195 : vector<8x64xf32>
    %197 = arith.mulf %196, %189 : vector<8x64xf32>
    %cst_75 = arith.constant -0.284496725 : f32
    %198 = vector.broadcast %cst_75 : f32 to vector<8x64xf32>
    %199 = arith.addf %197, %198 : vector<8x64xf32>
    %200 = arith.mulf %199, %189 : vector<8x64xf32>
    %cst_76 = arith.constant 0.254829586 : f32
    %201 = vector.broadcast %cst_76 : f32 to vector<8x64xf32>
    %202 = arith.addf %200, %201 : vector<8x64xf32>
    %203 = arith.mulf %202, %189 : vector<8x64xf32>
    %204 = arith.mulf %183, %183 : vector<8x64xf32>
    %cst_77 = arith.constant 0.000000e+00 : f32
    %205 = vector.broadcast %cst_77 : f32 to vector<8x64xf32>
    %206 = arith.subf %205, %204 : vector<8x64xf32>
    %207 = math.exp %206 : vector<8x64xf32>
    %208 = arith.mulf %203, %207 : vector<8x64xf32>
    %cst_78 = arith.constant 1.000000e+00 : f32
    %209 = vector.broadcast %cst_78 : f32 to vector<8x64xf32>
    %210 = arith.subf %209, %208 : vector<8x64xf32>
    %211 = arith.mulf %182, %210 : vector<8x64xf32>
    %cst_79 = arith.constant 1.000000e+00 : f32
    %212 = vector.broadcast %cst_79 : f32 to vector<8x64xf32>
    %213 = arith.addf %212, %211 : vector<8x64xf32>
    %214 = arith.mulf %175, %213 : vector<8x64xf32>
    %215 = arith.truncf %214 : vector<8x64xf32> to vector<8x64xbf16>
    %c0_80 = arith.constant 0 : index
    %c0_81 = arith.constant 0 : index
    %216 = vector.load %arg11[%c0_80, %c0_81] : memref<64x32xbf16, #tpu.memory_space<vmem>>, vector<64x32xbf16>
    %cst_82 = arith.constant dense<0.000000e+00> : vector<8x32xf32>
    %217 = tpu.matmul %215, %216, %cst_82 {dimension_numbers = #tpu.dot_dimension_numbers<[1], [0], [0], [1], [0, 0, 1, 1], [], []>} : vector<8x64xbf16>, vector<64x32xbf16>, vector<8x32xf32> -> vector<8x32xf32>
    %c0_83 = arith.constant 0 : index
    %c0_84 = arith.constant 0 : index
    %218 = vector.load %arg12[%c0_83, %c0_84] : memref<1x32xf32, #tpu.memory_space<vmem>>, vector<1x32xf32>
    %219 = vector.broadcast %218 : vector<1x32xf32> to vector<8x32xf32>
    %220 = arith.addf %217, %219 : vector<8x32xf32>
    %221 = arith.addf %220, %145 : vector<8x32xf32>
    %c0_85 = arith.constant 0 : index
    %c0_86 = arith.constant 0 : index
    %222 = vector.load %arg13[%c0_85, %c0_86] : memref<8x32xf32, #tpu.memory_space<vmem>>, vector<8x32xf32>
    tpu.vector_store %arg13[%c0_85, %c0_86], %221 {strides = array<i32>} : memref<8x32xf32, #tpu.memory_space<vmem>>, vector<8x32xf32>,
    return
  }
  func.func @transform_0(%arg0: i32) -> (i32, i32) {
    %c0_i32 = arith.constant 0 : i32
    %c0_i32_0 = arith.constant 0 : i32
    return %arg0, %c0_i32 : i32, i32
  }
  func.func @transform_1(%arg0: i32) -> (i32, i32, i32) {
    %c0_i32 = arith.constant 0 : i32
    %c0_i32_0 = arith.constant 0 : i32
    %c0_i32_1 = arith.constant 0 : i32
    return %arg0, %c0_i32, %c0_i32_0 : i32, i32, i32
  }
  func.func @transform_2(%arg0: i32) -> (i32, i32) {
    %c0_i32 = arith.constant 0 : i32
    %c0_i32_0 = arith.constant 0 : i32
    %c0_i32_1 = arith.constant 0 : i32
    return %c0_i32, %c0_i32_0 : i32, i32
  }
  func.func @transform_3(%arg0: i32) -> (i32, i32) {
    %c0_i32 = arith.constant 0 : i32
    %c0_i32_0 = arith.constant 0 : i32
    %c0_i32_1 = arith.constant 0 : i32
    return %c0_i32, %c0_i32_0 : i32, i32
  }
  func.func @transform_4(%arg0: i32) -> (i32, i32) {
    %c0_i32 = arith.constant 0 : i32
    %c0_i32_0 = arith.constant 0 : i32
    %c0_i32_1 = arith.constant 0 : i32
    return %c0_i32, %c0_i32_0 : i32, i32
  }
  func.func @transform_5(%arg0: i32) -> (i32, i32) {
    %c0_i32 = arith.constant 0 : i32
    %c0_i32_0 = arith.constant 0 : i32
    %c0_i32_1 = arith.constant 0 : i32
    return %c0_i32, %c0_i32_0 : i32, i32
  }
  func.func @transform_6(%arg0: i32) -> (i32, i32) {
    %c0_i32 = arith.constant 0 : i32
    %c0_i32_0 = arith.constant 0 : i32
    %c0_i32_1 = arith.constant 0 : i32
    return %c0_i32, %c0_i32_0 : i32, i32
  }
  func.func @transform_7(%arg0: i32) -> (i32, i32) {
    %c0_i32 = arith.constant 0 : i32
    %c0_i32_0 = arith.constant 0 : i32
    %c0_i32_1 = arith.constant 0 : i32
    return %c0_i32, %c0_i32_0 : i32, i32
  }
  func.func @transform_8(%arg0: i32) -> (i32, i32) {
    %c0_i32 = arith.constant 0 : i32
    %c0_i32_0 = arith.constant 0 : i32
    %c0_i32_1 = arith.constant 0 : i32
    return %c0_i32, %c0_i32_0 : i32, i32
  }
  func.func @transform_9(%arg0: i32) -> (i32, i32) {
    %c0_i32 = arith.constant 0 : i32
    %c0_i32_0 = arith.constant 0 : i32
    %c0_i32_1 = arith.constant 0 : i32
    return %c0_i32, %c0_i32_0 : i32, i32
  }
  func.func @transform_10(%arg0: i32) -> (i32, i32) {
    %c0_i32 = arith.constant 0 : i32
    %c0_i32_0 = arith.constant 0 : i32
    %c0_i32_1 = arith.constant 0 : i32
    return %c0_i32, %c0_i32_0 : i32, i32
  }
  func.func @transform_11(%arg0: i32) -> (i32, i32) {
    %c0_i32 = arith.constant 0 : i32
    %c0_i32_0 = arith.constant 0 : i32
    %c0_i32_1 = arith.constant 0 : i32
    return %c0_i32, %c0_i32_0 : i32, i32
  }
  func.func @transform_12(%arg0: i32) -> (i32, i32) {
    %c0_i32 = arith.constant 0 : i32
    %c0_i32_0 = arith.constant 0 : i32
    return %arg0, %c0_i32 : i32, i32
  }
  func.func @transform_13(%arg0: i32) -> (i32, i32, i32) {
    %c0_i32 = arith.constant 0 : i32
    %c0_i32_0 = arith.constant 0 : i32
    %c0_i32_1 = arith.constant 0 : i32
    return %arg0, %c0_i32, %c0_i32_0 : i32, i32, i32
  }
}

</mosaic_0001>

<bundles_post_ra>
// kernel: tpu_custom_call.1
= control target key start
LH: loop header
LB: loop body
LE: loop exit
PB: predicated region body
PF: predicated region fallthrough
CT: control target
= control target key end

     0   :  { %s3108_s0 = inlined_call_operand.vmem [shape: f32[16,32], index: 0, kind: input, shape index: {}]   ;;  %s3109_s1 = inlined_call_operand.vmem [shape: bf16[2,8,8], index: 1, kind: input, shape index: {}]   ;;  %s3110_s2 = inlined_call_operand.vmem [shape: bf16[32,1536], index: 2, kind: input, shape index: {}]   ;;  %s3111_s3 = inlined_call_operand.vmem [shape: f32[1,1536], index: 3, kind: input, shape index: {}]   ;;  %s3112_s4 = inlined_call_operand.vmem [shape: bf16[512,32], index: 4, kind: input, shape index: {}]   ;;  %s3113_s5 = inlined_call_operand.vmem [shape: f32[1,32], index: 5, kind: input, shape index: {}]   ;;  %s3114_s6 = inlined_call_operand.vmem [shape: f32[1,32], index: 6, kind: input, shape index: {}]   ;;  %s3115_s7 = inlined_call_operand.vmem [shape: f32[1,32], index: 7, kind: input, shape index: {}]   ;;  %s3116_s8 = inlined_call_operand.vmem [shape: bf16[32,64], index: 8, kind: input, shape index: {}]   ;;  %s3117_s9 = inlined_call_operand.vmem [shape: f32[1,64], index: 9, kind: input, shape index: {}]   ;;  %s3118_s10 = inlined_call_operand.vmem [shape: bf16[64,32], index: 10, kind: input, shape index: {}]   ;;  %s3119_s11 = inlined_call_operand.vmem [shape: f32[1,32], index: 11, kind: input, shape index: {}]   ;;  %s3120_s12 = inlined_call_operand.hbm [shape: f32[16,32], index: 12, kind: output, shape index: {0}]   ;;  %s3121_s13 = inlined_call_operand.hbm [shape: f32[8,8,8], index: 13, kind: output, shape index: {1}]  }
   0x1   :  { %3127 = sst [smem:[#allocation15_spill]] %s3108_s0 }
   0x2   :  { %19 = vsyncpa [#allocation5], 0 }
   0x3   :  { %21 = vsyncpa [#allocation5 + $0x1], 0 }
   0x4   :  { %22 = vsyncpa [#allocation7], 0 }
   0x5   :  { %24 = vsyncpa [#allocation7 + $0x1], 0  ;;  %s2633_s25 = smov 0   ;;  %s2635_s26 = smov 0  }
   0x6   :  { %s2637_s27 = smov 0   ;;  %s2639_s28 = smov 0  }
   0x7 LB: > { %3128 = sst [smem:[#allocation10_spill]] %s2541_s25  ;;  %s2654_s29 = sadd.s32 4294967295, %s2553_s28   ;;  %s2553_s28 = sphi %s2639_s28, %s3138_s28   ;;  %s2549_s27 = sphi %s2637_s27, %s3140_s27   ;;  %s2545_s26 = sphi %s2635_s26, %s3142_s26   ;;  %s2541_s25 = sphi %s2633_s25, %s3141_s25  }
   0x8   : > { %3129 = sst [smem:[#allocation11_spill]] %s2549_s27  ;;  %s2079_s30 = sadd.s32 4294967294, %s2553_s28  }
   0x9   : > { %s2658_s14 = sadd.s32 1, %s2553_s28   ;;  %s299_s15 = sadd.s32 1, %s2549_s27 }
   0xa   : > { %3130 = sst [smem:[#allocation12_spill]] %s2658_s14  ;;  %s296_s16 = ssub.s32 %s2553_s28, %s2658_s14 }
   0xb   : > { %p309_p0 = scmp.ne.s32.totalorder %s2549_s27, %s2545_s26  ;;  %p297_p1 = scmp.eq.s32.totalorder %s296_s16, 0 }
   0xc   : > { %p310_p2 = scmp.eq.s32.totalorder %s2654_s29, 1  ;;  %p315_p3 = scmp.ne.s32.totalorder %s2545_s26, %s2541_s25 }
   0xd   : > { %p316_p4 = scmp.eq.s32.totalorder %s2079_s30, 1  ;;  %p2082_p7 = scmp.ge.s32.totalorder %s2553_s28, 1 }
   0xe   : > { %s2669_s17 = scalar_select %p297_p1, %s2549_s27, %s299_s15  }
   0xf   : > { %p2671_p5 = por %p310_p2, %p309_p0  ;;  %p2675_p6 = por %p316_p4, %p315_p3 }
  0x10   : > { %3131 = sst [smem:[#allocation13_spill]] %s2669_s17  ;;  %p404_p8 = scmp.lt.s32.totalorder %s2553_s28, 3 }
  0x11   : > { %s3133_s19 = scalar_select %p2675_p6, 1, 0 }
  0x12   : > { %p405_p9 = pnand %p2082_p7, %p404_p8 }
  0x13   : > { %3134 = sst [smem:[#allocation14_spill]] %s3133_s19  ;;  %v2363_v0 = vld [vmem:[%s3110_s2 + $0x4] ss:$48 sps:$4 sm:$0xff] (!%p405_p9)   ;;  %p456_p10 = scmp.lt.s32.totalorder (!%p405_p9), %s2654_s29, 1  ;;  %v2365_v1 = vld [vmem:[%s3110_s2] ss:$48 sps:$4 sm:$0xff] (!%p405_p9)   ;;  %v496_v28 = vlaneseq (!%p405_p9) }
  0x14   : > { %408 = sbr.rel (%p405_p9) target bundleno = 2061 (0x80d), region = 68  ;;  %v2555_v2 = vmov (!%p405_p9), 0   ;;  %680 = vmatprep.subr.bf16.mxu0 (!%p405_p9), %v2363_v0  ;;  %v2366_v3 = vld [vmem:[%s3110_s2 + $0x64] ss:$48 sps:$4 sm:$0xff] (!%p405_p9)   ;;  %v2368_v4 = vld [vmem:[%s3110_s2 + $0x60] ss:$48 sps:$4 sm:$0xff] (!%p405_p9)  }
  0x15   : > { %712 = vmatprep.mubr.bf16.mxu0 (!%p405_p9), %v2555_v2  ;;  %753 = vmatprep.mubr.bf16.mxu1 (!%p405_p9), %v2555_v2  ;;  %v2371_v5 = vld [vmem:[%s3110_s2 + $0x14] ss:$48 sps:$4 sm:$0xff] (!%p405_p9)   ;;  %s3135_s0 = sld [smem:[#allocation15_spill]] (!%p405_p9)  ;;  %v2369_v6 = vld [vmem:[%s3110_s2 + $0x10] ss:$48 sps:$4 sm:$0xff] (!%p405_p9)   ;;  %vm676_vm0 = vcmask (!%p405_p9), 261120  }
  0x16   : > { %681 = vmatpush1.bf16.msra.mxu0 (!%p405_p9), %v2365_v1  ;;  %v2375_v8 = vld [vmem:[%s3110_s2 + $0xc] ss:$48 sps:$4 sm:$0xff] (!%p405_p9)   ;;  %v2377_v9 = vld [vmem:[%s3110_s2 + $0x8] ss:$48 sps:$4 sm:$0xff] (!%p405_p9)   ;;  %v2374_v12 = vld [vmem:[%s3110_s2 + $0x74] ss:$48 sps:$4 sm:$0xff] (!%p405_p9)  }
  0x17   : > { %682 = vmatprep.subr.bf16.mxu0 (!%p405_p9), %v2366_v3  ;;  %v2378_v11 = vld [vmem:[%s3110_s2 + $0x6c] ss:$48 sps:$4 sm:$0xff] (!%p405_p9)   ;;  %721 = vmatprep.subr.bf16.mxu1 (!%p405_p9), %v2375_v8  ;;  %v2380_v13 = vld [vmem:[%s3110_s2 + $0x68] ss:$48 sps:$4 sm:$0xff] (!%p405_p9)   ;;  %v2372_v14 = vld [vmem:[%s3110_s2 + $0x70] ss:$48 sps:$4 sm:$0xff] (!%p405_p9)  }
  0x18   : > { %722 = vmatpush1.bf16.msra.mxu1 (!%p405_p9), %v2377_v9  ;;  %v2383_v15 = vld [vmem:[%s3110_s2 + $0x1c] ss:$48 sps:$4 sm:$0xff] (!%p405_p9)   ;;  %v2381_v16 = vld [vmem:[%s3110_s2 + $0x18] ss:$48 sps:$4 sm:$0xff] (!%p405_p9)   ;;  %v2389_v18 = vld [vmem:[%s3110_s2 + $0x24] ss:$48 sps:$4 sm:$0xff] (!%p405_p9)  }
  0x19   : > { %723 = vmatprep.subr.bf16.mxu1 (!%p405_p9), %v2378_v11  ;;  %v2386_v17 = vld [vmem:[%s3110_s2 + $0x7c] ss:$48 sps:$4 sm:$0xff] (!%p405_p9)   ;;  %v2387_v19 = vld [vmem:[%s3110_s2 + $0x20] ss:$48 sps:$4 sm:$0xff] (!%p405_p9)   ;;  %v2384_v20 = vld [vmem:[%s3110_s2 + $0x78] ss:$48 sps:$4 sm:$0xff] (!%p405_p9)  }
  0x1a   : > { %683 = vmatpush1.bf16.msra.mxu0 (!%p405_p9), %v2368_v4  ;;  %v2392_v21 = vld [vmem:[%s3110_s2 + $0x84] ss:$48 sps:$4 sm:$0xff] (!%p405_p9)   ;;  %v2390_v22 = vld [vmem:[%s3110_s2 + $0x80] ss:$48 sps:$4 sm:$0xff] (!%p405_p9)   ;;  %v2556_v23 = vmov (!%p405_p9), 0.0   ;;  %vm2557_vm1 = vmmov (!%p405_p9), 0  }
  0x1b   : > { %s2692_s15 = scalar_select %p456_p10, %s2654_s29, 1  ;;  %762 = vmatprep.subr.bf16.mxu0 %v2371_v5  ;;  %v2393_v24 = vld [vmem:[%s3110_s2 + $0x28] ss:$48 sps:$4 sm:$0xff]   ;;  %v2395_v25 = vld [vmem:[%s3110_s2 + $0x2c] ss:$48 sps:$4 sm:$0xff]   ;;  %v2777_v29 = vshrl.u32 %v496_v28, 7 }
  0x1c   : > { %724 = vmatpush1.bf16.msra.mxu1 %v2380_v13  ;;  %v2398_v26 = vld [vmem:[%s3110_s2 + $0x8c] ss:$48 sps:$4 sm:$0xff]   ;;  %v2396_v27 = vld [vmem:[%s3110_s2 + $0x88] ss:$48 sps:$4 sm:$0xff]   ;;  %v492_v35 = vld [vmem:[%s3111_s3] sm:$0xff]  ;;  %vm1007_vm2 = vcmask 1043456  }
  0x1d   : > { %s2085_s21 = sshll.u32 %s2692_s15, 3  ;;  %803 = vmatprep.subr.bf16.mxu1 %v2383_v15  ;;  %v514_v32 = vsub.s32 4, %v2777_v29  ;;  %v498_v37 = vsub.s32 0, %v2777_v29  ;;  %v518_v39 = vsub.s32 5, %v2777_v29  ;;  %v522_v51 = vsub.s32 6, %v2777_v29  ;;  %s2086_s24 = sshll.u32 %s2692_s15, 2 }
  0x1e   : > { %s459_s14 = scalar_lea.vmem %s3135_s0, %s2085_s21  ;;  %v502_v53 = vsub.s32 1, %v2777_v29  ;;  %v506_v1 = vsub.s32 2, %v2777_v29  ;;  %v510_v9 = vsub.s32 3, %v2777_v29  ;;  %vm989_vm3 = vcmask 64512   ;;  %s463_s20 = scalar_lea.vmem %s3109_s1, %s2086_s24 }
  0x1f   : > { %v2707_v7 = vld [vmem:[%s459_s14] sm:$0xff]  ;;  %v515_v36 = vrot.slane %v492_v35, %v514_v32  ;;  %v499_v46 = vrot.slane %v492_v35, %v498_v37  ;;  %v519_v49 = vrot.slane %v492_v35, %v518_v39  ;;  %v523_v58 = vrot.slane %v492_v35, %v522_v51  ;;  %s2870_s27 = sand.u32 1, %s2545_s26   ;;  %s2559_s23 = smov [#allocation6]  }
  0x20   : > { %v467_v10 = vpack.c.bf16 %v2707_v7, %v2707_v7  ;;  %v503_v61 = vrot.slane %v492_v35, %v502_v53  ;;  %v507_v5 = vrot.slane %v492_v35, %v506_v1  ;;  %s2084_s17 = sshll.u32 %s2870_s27, 5  ;;  %vm1895_vm5 = vcmask 523264   ;;  %s1947_s19 = scalar_lea.sflag [#allocation7], %s2870_s27 }
  0x21   : > { %s2877_s15 = scalar_lea.vmem [#allocation6], %s2084_s17  ;;  %s2176_s17 = sshll.u32 %s2654_s29, 9 }
  0x22   : > { %2111 = vmatmul.mubr.msk.bf16.vlgmr.msra.gmra.mrb[0].mxu0 %vm676_vm0, %v467_v10  ;;  %2112 = vmatmul.mubr.msk.bf16.vlgmr.msra.gmra.mrb[0].mxu1 %vm676_vm0, %v467_v10  ;;  %s3029_s25 = scalar_lea.hbm %s3121_s13, %s2176_s17  ;;  %s2463_s24 = sshll.u32 %s2559_s23, 4  ;;  %s2464_s24 = int_to_ptr.vmem [resolvable:$false] %s2463_s24 }
  0x23   : > { %763 = vmatpush1.bf16.msra.mxu0 %v2369_v6  ;;  %794 = vmatprep.mubr.bf16.mxu0 %v2555_v2 }
  0x24   : > { %764 = vmatprep.subr.bf16.mxu0 %v2374_v12  ;;  %804 = vmatpush1.bf16.msra.mxu1 %v2381_v16  ;;  %v511_v12 = vrot.slane %v492_v35, %v510_v9  ;;  %v2808_v16 = vld [vmem:[%s3111_s3 + $0x8] sm:$0xf] }
  0x25   : > { %835 = vmatprep.mubr.bf16.mxu1 %v2555_v2  ;;  %805 = vmatprep.subr.bf16.mxu1 %v2386_v17  ;;  %v531_v17 = vrot.slane %v2808_v16, %v498_v37 }
  0x27   : > { %765 = vmatpush1.bf16.msra.mxu0 %v2372_v14 }
  0x28   : > { %844 = vmatprep.subr.bf16.mxu0 %v2389_v18  ;;  %806 = vmatpush1.bf16.msra.mxu1 %v2384_v20 }
  0x29   : > { %885 = vmatprep.subr.bf16.mxu1 %v2395_v25 }
  0x2a   : > { %2113 = vmatmul.mubr.msk.bf16.vlgmr.msra.gmra.mrb[4].mxu0 %vm676_vm0, %v467_v10 }
  0x2b   : > { %845 = vmatpush1.bf16.msra.mxu0 %v2387_v19  ;;  %876 = vmatprep.mubr.bf16.mxu0 %v2555_v2 }
  0x2c   : > { %2114 = vmatmul.mubr.msk.bf16.vlgmr.msra.gmra.mrb[4].mxu1 %vm676_vm0, %v467_v10  ;;  %846 = vmatprep.subr.bf16.mxu0 %v2392_v21 }
  0x2d   : > { %917 = vmatprep.mubr.bf16.mxu1 %v2555_v2  ;;  %886 = vmatpush1.bf16.msra.mxu1 %v2393_v24  ;;  %v526_v2 = vsub.s32 7, %v2777_v29 }
  0x2e   : > { %887 = vmatprep.subr.bf16.mxu1 %v2398_v26 }
  0x2f   : > { %847 = vmatpush1.bf16.msra.mxu0 %v2390_v22  ;;  %v527_v6 = vrot.slane %v492_v35, %v526_v2 }
  0x30   : > { %2245 = vmatprep.subr.bf16.mxu0 %v2556_v23 }
  0x31   : > { %888 = vmatpush1.bf16.msra.mxu1 %v2396_v27 }
  0x32   : > { %2115 = vmatmul.mubr.msk.bf16.vlgmr.msra.gmra.mrb[8].mxu0 %vm676_vm0, %v467_v10  ;;  %2251 = vmatprep.subr.bf16.mxu1 %v2556_v23 }
  0x33   : > { %2247 = vmatprep.mubr.msk.bf16.mxu0 %vm2557_vm1, %v2556_v23 }
  0x34   : > { %2116 = vmatmul.mubr.msk.bf16.vlgmr.msra.gmra.mrb[8].mxu1 %vm676_vm0, %v467_v10 }
  0x35   : > { %2253 = vmatprep.mubr.msk.bf16.mxu1 %vm2557_vm1, %v2556_v23 }
  0xf5   : > { %v714_v30 = vpop.f32.mrb[0].mxu0  ;;  %v755_v38 = vpop.f32.mrb[0].mxu1 }
  0xf6   : > { %v716_v31 = vpop.f32.mrb[1].mxu0  ;;  %v757_v40 = vpop.f32.mrb[1].mxu1  ;;  %v715_v52 = vadd.f32 %v714_v30, %v499_v46  ;;  %v756_v8 = vadd.f32 %v755_v38, %v507_v5 }
  0xf7   : > { %v718_v33 = vpop.f32.mrb[2].mxu0  ;;  %v759_v42 = vpop.f32.mrb[2].mxu1  ;;  %v717_v0 = vadd.f32 %v716_v31, %v503_v61  ;;  %v758_v14 = vadd.f32 %v757_v40, %v511_v12  ;;  %v2400_v12 = vld [vmem:[%s3112_s4] sm:$0xff]  }
  0xf8   : > { %v719_v34 = vpop.f32.mrb[3].mxu0  ;;  %v760_v45 = vpop.f32.mrb[3].mxu1  ;;  %v944_v60 = vpack.c.bf16 %v715_v52, %v715_v52  ;;  %v1164_v11 = vpack.c.bf16 %v756_v8, %v756_v8 }
  0xf9   : > { %v1056_v4 = vpack.c.bf16 %v717_v0, %v717_v0  ;;  %v1272_v15 = vpack.c.bf16 %v758_v14, %v758_v14  ;;  %v2402_v14 = vld [vmem:[%s3112_s4 + $0x8] sm:$0xff]  }
  0xfd   : > { %v796_v41 = vpop.f32.mrb[4].mxu0 }
  0xfe   : > { %v797_v43 = vadd.f32 %v796_v41, %v515_v36  ;;  %v798_v44 = vpop.f32.mrb[5].mxu0 }
  0xff   : > { %v800_v47 = vpop.f32.mrb[6].mxu0  ;;  %v837_v54 = vpop.f32.mrb[4].mxu1  ;;  %v799_v55 = vadd.f32 %v798_v44, %v519_v49 }
 0x100   : > { %v946_v48 = vpack.c.bf16 %v797_v43, %v797_v43  ;;  %v801_v50 = vpop.f32.mrb[7].mxu0  ;;  %v839_v56 = vpop.f32.mrb[5].mxu1  ;;  %v838_v63 = vadd.f32 %v837_v54, %v523_v58 }
 0x101   : > { %v841_v57 = vpop.f32.mrb[6].mxu1  ;;  %v1058_v62 = vpack.c.bf16 %v799_v55, %v799_v55  ;;  %v840_v10 = vadd.f32 %v839_v56, %v527_v6 }
 0x102   : > { %2246 = vmatpush3.bf16.xpose.msra.mxu0 %v946_v48  ;;  %v842_v59 = vpop.f32.mrb[7].mxu1  ;;  %v1166_v3 = vpack.c.bf16 %v838_v63, %v838_v63 }
 0x103   : > { %2257 = vmatprep.subr.bf16.mxu0 %v2556_v23  ;;  %v1274_v13 = vpack.c.bf16 %v840_v10, %v840_v10 }
 0x105   : > { %v878_v18 = vpop.f32.mrb[8].mxu0 }
 0x106   : > { %v879_v19 = vadd.f32 %v878_v18, %v531_v17  ;;  %v2811_v20 = vpop.f32.mrb[9].mxu0  ;;  %v2404_v17 = vld [vmem:[%s3112_s4 + $0x10] sm:$0xff]   ;;  %v2405_v18 = vld [vmem:[%s3112_s4 + $0x58] sm:$0xff]  }
 0x107   : > { %v882_v21 = vpop.f32.mrb[10].mxu0  ;;  %v919_v5 = vpop.f32.mrb[8].mxu1 }
 0x108   : > { %v948_v22 = vpack.c.bf16 %v879_v19, %v879_v19  ;;  %v883_v24 = vpop.f32.mrb[11].mxu0  ;;  %v921_v6 = vpop.f32.mrb[9].mxu1  ;;  %v2406_v19 = vld [vmem:[%s3112_s4 + $0x18] sm:$0xff]   ;;  %v2407_v21 = vld [vmem:[%s3112_s4 + $0x60] sm:$0xff]  }
 0x109   : > { %2248 = vmatmul.mubr.bf16.vlgmr.msra.gmra.mrb[12].mxu0 %v944_v60  ;;  %v923_v8 = vpop.f32.mrb[10].mxu1 }
 0x10a   : > { %2258 = vmatpush3.bf16.xpose.msra.mxu0 %v1058_v62  ;;  %2259 = vmatprep.mubr.msk.bf16.mxu0 %vm2557_vm1, %v2556_v23  ;;  %v1009_v25 = vsel %vm1007_vm2, %v948_v22, 0  ;;  %v924_v10 = vpop.f32.mrb[11].mxu1  ;;  %v2409_v22 = vld [vmem:[%s3112_s4 + $0x20] sm:$0xff]   ;;  %v2425_v8 = vld [vmem:[%s3112_s4 + $0xe8] sm:$0xff]  }
 0x10b   : > { %2269 = vmatprep.subr.bf16.mxu0 %v2556_v23  ;;  %2252 = vmatpush3.bf16.msra.mxu1 %v1009_v25  ;;  %v535_v25 = vrot.slane %v2808_v16, %v502_v53  ;;  %v2426_v10 = vld [vmem:[%s3112_s4 + $0xa8] sm:$0xff]  }
 0x10c   : > { %2263 = vmatprep.subr.bf16.mxu1 %v2556_v23 }
 0x111   : > { %2260 = vmatmul.mubr.bf16.vlgmr.msra.gmra.mrb[16].mxu0 %v1056_v4 }
 0x112   : > { %2270 = vmatpush3.bf16.xpose.msra.mxu0 %v1166_v3  ;;  %2271 = vmatprep.mubr.msk.bf16.mxu0 %vm2557_vm1, %v2556_v23 }
 0x113   : > { %2281 = vmatprep.subr.bf16.mxu0 %v2556_v23 }
 0x119   : > { %2272 = vmatmul.mubr.bf16.vlgmr.msra.gmra.mrb[20].mxu0 %v1164_v11  ;;  %v2399_v11 = vld [vmem:[%s3112_s4 + $0x40] sm:$0xff]  }
 0x11a   : > { %2282 = vmatpush3.bf16.xpose.msra.mxu0 %v1274_v13  ;;  %2283 = vmatprep.mubr.msk.bf16.mxu0 %vm2557_vm1, %v2556_v23  ;;  %v2401_v13 = vld [vmem:[%s3112_s4 + $0x48] sm:$0xff]  }
 0x11b   : > { %2193 = vmatprep.subr.bf16.mxu0 %v2399_v11  ;;  %v2427_v11 = vld [vmem:[%s3112_s4 + $0xf0] sm:$0xff]  }
 0x121   : > { %2284 = vmatmul.mubr.bf16.vlgmr.msra.gmra.mrb[24].mxu0 %v1272_v15  ;;  %v2403_v15 = vld [vmem:[%s3112_s4 + $0x50] sm:$0xff]  }
 0x122   : > { %2194 = vmatpush3.bf16.msra.mxu0 %v2400_v12  ;;  %v2428_v12 = vld [vmem:[%s3112_s4 + $0xb0] sm:$0xff]  }
 0x123   : > { %2195 = vmatprep.subr.bf16.mxu0 %v2401_v13  ;;  %v2429_v13 = vld [vmem:[%s3112_s4 + $0xf8] sm:$0xff]  }
 0x126   : > { %2196 = vmatpush3.bf16.msra.mxu0 %v2402_v14  ;;  %v2430_v14 = vld [vmem:[%s3112_s4 + $0xb8] sm:$0xff]  }
 0x127   : > { %2197 = vmatprep.subr.bf16.mxu0 %v2403_v15 }
 0x12a   : > { %2198 = vmatpush3.bf16.msra.mxu0 %v2404_v17 }
 0x12b   : > { %2199 = vmatprep.subr.bf16.mxu0 %v2405_v18 }
 0x12e   : > { %2200 = vmatpush3.bf16.msra.mxu0 %v2406_v19 }
 0x12f   : > { %2201 = vmatprep.subr.bf16.mxu0 %v2407_v21 }
 0x132   : > { %2202 = vmatpush3.bf16.msra.mxu0 %v2409_v22 }
 0x1dc   : > { %v983_v26 = vpop.f32.mrb[12].mxu0 }
 0x1dd   : > { %v2249_v27 = vpop.f32.mrb[13].mxu0  ;;  %v990_v28 = vsel %vm989_vm3, %v983_v26, -inf }
 0x1de   : > { %991 = vmax.xlane.f32.xlu0 %v990_v28  ;;  %v986_v30 = vpop.f32.mrb[14].mxu0  ;;  %v881_v28 = vadd.f32 %v2811_v20, %v535_v25 }
 0x1df   : > { %v2250_v31 = vpop.f32.mrb[15].mxu0 }
 0x1e4   : > { %v1095_v32 = vpop.f32.mrb[16].mxu0 }
 0x1e5   : > { %v2261_v33 = vpop.f32.mrb[17].mxu0  ;;  %v1101_v34 = vsel %vm989_vm3, %v1095_v32, -inf }
 0x1e6   : > { %1102 = vmax.xlane.f32.xlu0 %v1101_v34  ;;  %v1098_v35 = vpop.f32.mrb[18].mxu0  ;;  %v539_v33 = vrot.slane %v2808_v16, %v506_v1  ;;  %v1060_v34 = vpack.c.bf16 %v881_v28, %v881_v28 }
 0x1e7   : > { %v2262_v36 = vpop.f32.mrb[19].mxu0 }
 0x1e8   : > { %v920_v53 = vadd.f32 %v919_v5, %v539_v33  ;;  %v1120_v20 = vsel %vm1007_vm2, %v1060_v34, 0  ;;  %v2423_v5 = vld [vmem:[%s3112_s4 + $0xe0] sm:$0xff]  }
 0x1ec   : > { %v1203_v37 = vpop.f32.mrb[20].mxu0 }
 0x1ed   : > { %v2273_v38 = vpop.f32.mrb[21].mxu0  ;;  %v1209_v39 = vsel %vm989_vm3, %v1203_v37, -inf }
 0x1ee   : > { %1210 = vmax.xlane.f32.xlu1 %v1209_v39  ;;  %v1206_v40 = vpop.f32.mrb[22].mxu0  ;;  %v1168_v39 = vpack.c.bf16 %v920_v53, %v920_v53 }
 0x1ef   : > { %v2274_v41 = vpop.f32.mrb[23].mxu0 }
 0x1f0   : > { %v543_v41 = vrot.slane %v2808_v16, %v510_v9 }
 0x1f4   : > { %v1311_v42 = vpop.f32.mrb[24].mxu0 }
 0x1f5   : > { %v2285_v43 = vpop.f32.mrb[25].mxu0  ;;  %v1317_v44 = vsel %vm989_vm3, %v1311_v42, -inf }
 0x1f6   : > { %1318 = vmax.xlane.f32.xlu1 %v1317_v44  ;;  %v1314_v45 = vpop.f32.mrb[26].mxu0 }
 0x1f7   : > { %v2286_v46 = vpop.f32.mrb[27].mxu0  ;;  %v922_v45 = vadd.f32 %v921_v6, %v543_v41  ;;  %v2424_v6 = vld [vmem:[%s3112_s4 + $0xa0] sm:$0xff]  }
 0x1f8   : > { %v2124_v41 = vld [vmem:[%s3113_s5] ss:$0 sm:$0xff] }
 0x1f9   : > { %v1276_v16 = vpack.c.bf16 %v922_v45, %v922_v45 }
 0x26b   : > { %v992_v47 = vpop.xlane.xlu0 %991 }
 0x26c   : > { %v993_v48 = vsub.f32 %v983_v26, %v992_v47  ;;  %v938_v26 = vld [vmem:[%s463_s20] sm:$0xf]  ;;  %s1973_s20 = sshll.u32 %s2877_s15, 4  ;;  %s3024_s20 = int_to_ptr.vmem [resolvable:$true] %s1973_s20 }
 0x26d   : > { %v939_v30 = vunpack.c.l.bf16 %v938_v26  ;;  %s2459_s22 = scalar_lea.vmem %s3024_s20, 512  ;;  %p2466_p0 = scmp.lt.s32.totalorder %s3024_s20, %s2464_s24 }
 0x26e   : > { %v994_v49 = vmul.f32 1.442695, %v993_v48  ;;  %v2408_v48 = vld [vmem:[%s3112_s4 + $0xc0] sm:$0xff]   ;;  %p2460_p11 = scmp.ne.s32.totalorder %s3024_s20, %s2459_s22 }
 0x270   : > { %2437 = vpow2.f32 %v994_v49  ;;  %v1336_v49 = vsel %vm1007_vm2, %v1276_v16, 0  ;;  %p2461_p12 = pnand %p2460_p11, %p2671_p5 }
 0x272   : > { %p2462_p13 = pneg %p2461_p12 }
 0x273   : > { %v1103_v50 = vpop.xlane.xlu0 %1102 }
 0x274   : > { %v1104_v51 = vsub.f32 %v1095_v32, %v1103_v50 }
 0x276   : > { %v1105_v52 = vmul.f32 1.442695, %v1104_v51 }
 0x278   : > { %2439 = vpow2.f32 %v1105_v52 }
 0x27a   : > { %v2438_v54 = vpop.eup %2437 }
 0x27b   : > { %v1211_v55 = vpop.xlane.xlu1 %1210  ;;  %v996_v56 = vsel %vm989_vm3, %v2438_v54, 0.0 }
 0x27c   : > { %v1212_v57 = vsub.f32 %v1203_v37, %v1211_v55  ;;  %997 = vadd.xlane.f32.xlu0 %v996_v56  ;;  %v2411_v56 = vld [vmem:[%s3112_s4 + $0x68] sm:$0xff]  }
 0x27d   : > { %2203 = vmatprep.subr.bf16.mxu0 %v2411_v56 }
 0x27e   : > { %v1213_v58 = vmul.f32 1.442695, %v1212_v57  ;;  %v2412_v57 = vld [vmem:[%s3112_s4 + $0xc8] sm:$0xff]  }
 0x280   : > { %2441 = vpow2.f32 %v1213_v58  ;;  %v2413_v58 = vld [vmem:[%s3112_s4 + $0x28] sm:$0xff]  }
 0x281   : > { %2204 = vmatpush3.bf16.msra.mxu0 %v2413_v58 }
 0x282   : > { %v2820_v59 = vpop.eup %2439 }
 0x283   : > { %v1319_v60 = vpop.xlane.xlu1 %1318  ;;  %v1107_v61 = vsel %vm989_vm3, %v2820_v59, 0.0 }
 0x284   : > { %v1320_v62 = vsub.f32 %v1311_v42, %v1319_v60  ;;  %1108 = vadd.xlane.f32.xlu1 %v1107_v61  ;;  %v1228_v42 = vsel %vm1007_vm2, %v1168_v39, 0  ;;  %v2415_v60 = vld [vmem:[%s3112_s4 + $0x70] sm:$0xff]  }
 0x285   : > { %v2416_v61 = vld [vmem:[%s3112_s4 + $0xd0] sm:$0xff]   ;;  %2205 = vmatprep.subr.bf16.mxu0 %v2415_v60 }
 0x286   : > { %v1321_v63 = vmul.f32 1.442695, %v1320_v62  ;;  %v2417_v62 = vld [vmem:[%s3112_s4 + $0x30] sm:$0xff]  }
 0x287   : > { %2206 = vmatpush3.bf16.msra.mxu0 %v2417_v62 }
 0x288   : > { %2443 = vpow2.f32 %v1321_v63  ;;  %v2418_v63 = vld [vmem:[%s3112_s4 + $0x90] sm:$0xff]  }
 0x28a   : > { %v2824_v0 = vpop.eup %2441 }
 0x28b   : > { %v1215_v2 = vsel %vm989_vm3, %v2824_v0, 0.0 }
 0x28c   : > { %1216 = vadd.xlane.f32.xlu0 %v1215_v2  ;;  %v2420_v2 = vld [vmem:[%s3112_s4 + $0xd8] sm:$0xff]  }
 0x292   : > { %v2828_v3 = vpop.eup %2443 }
 0x293   : > { %v1323_v4 = vsel %vm989_vm3, %v2828_v3, 0.0 }
 0x294   : > { %1324 = vadd.xlane.f32.xlu1 %v1323_v4  ;;  %v2422_v4 = vld [vmem:[%s3112_s4 + $0x98] sm:$0xff]  }
 0x309   : > { %v998_v24 = vpop.xlane.xlu0 %997 }
 0x30a   : > { %2445 = vrcp.f32 %v998_v24 }
 0x311   : > { %v1109_v27 = vpop.xlane.xlu1 %1108 }
 0x312   : > { %2447 = vrcp.f32 %v1109_v27 }
 0x314   : > { %v2446_v31 = vpop.eup %2445 }
 0x315   : > { %v1000_v32 = vmul.f32 %v2446_v31, %v2438_v54  ;;  %v2410_v54 = vld [vmem:[%s3112_s4 + $0x80] sm:$0xff]  }
 0x317   : > { %v1001_v35 = vmul.f32 %v1000_v32, %v939_v30 }
 0x319   : > { %v1217_v36 = vpop.xlane.xlu0 %1216  ;;  %v1003_v37 = vpack.c.bf16 %v1001_v35, %v1001_v35  ;;  %1002 = vst.msk [vmem:[%s2877_s15] sm:$0xff] %vm989_vm3, %v1001_v35 }
 0x31a   : > { %2449 = vrcp.f32 %v1217_v36 }
 0x31b   : > { %2254 = vmatmul.mubr.msk.bf16.vlgmr.msra.gmra.mrb[12].mxu1 %vm989_vm3, %v1003_v37 }
 0x31c   : > { %v2448_v38 = vpop.eup %2447  ;;  %2264 = vmatpush3.bf16.msra.mxu1 %v1120_v20  ;;  %2265 = vmatprep.mubr.msk.bf16.mxu1 %vm2557_vm1, %v2556_v23 }
 0x31d   : > { %v1111_v1 = vmul.f32 %v2448_v38, %v2820_v59  ;;  %2275 = vmatprep.subr.bf16.mxu1 %v2556_v23  ;;  %v2414_v59 = vld [vmem:[%s3112_s4 + $0x88] sm:$0xff]  }
 0x31f   : > { %v1112_v40 = vmul.f32 %v1111_v1, %v939_v30 }
 0x321   : > { %v1325_v43 = vpop.xlane.xlu1 %1324  ;;  %v1115_v44 = vpack.c.bf16 %v1112_v40, %v1112_v40  ;;  %2118 = vst.msk [vmem:[%s2877_s15 + $0x8] sm:$0xff] %vm989_vm3, %v1112_v40 }
 0x322   : > { %2451 = vrcp.f32 %v1325_v43 }
 0x323   : > { %2266 = vmatmul.mubr.msk.bf16.vlgmr.msra.gmra.mrb[16].mxu1 %vm989_vm3, %v1115_v44 }
 0x324   : > { %v2450_v46 = vpop.eup %2449  ;;  %2276 = vmatpush3.bf16.msra.mxu1 %v1228_v42  ;;  %2277 = vmatprep.mubr.msk.bf16.mxu1 %vm2557_vm1, %v2556_v23 }
 0x325   : > { %v1219_v29 = vmul.f32 %v2450_v46, %v2824_v0  ;;  %2287 = vmatprep.subr.bf16.mxu1 %v2556_v23  ;;  %v2419_v0 = vld [vmem:[%s3112_s4 + $0x78] sm:$0xff]  }
 0x326   : > { %2207 = vmatprep.subr.bf16.mxu0 %v2419_v0 }
 0x327   : > { %v1220_v9 = vmul.f32 %v1219_v29, %v939_v30 }
 0x329   : > { %v1223_v47 = vpack.c.bf16 %v1220_v9, %v1220_v9  ;;  %2120 = vst.msk [vmem:[%s2877_s15 + $0x10] sm:$0xff] %vm989_vm3, %v1220_v9 }
 0x32b   : > { %2278 = vmatmul.mubr.msk.bf16.vlgmr.msra.gmra.mrb[20].mxu1 %vm989_vm3, %v1223_v47 }
 0x32c   : > { %v2452_v50 = vpop.eup %2451  ;;  %2288 = vmatpush3.bf16.msra.mxu1 %v1336_v49  ;;  %2289 = vmatprep.mubr.msk.bf16.mxu1 %vm2557_vm1, %v2556_v23 }
 0x32d   : > { %v1327_v51 = vmul.f32 %v2452_v50, %v2828_v3  ;;  %2215 = vmatprep.subr.bf16.mxu1 %v2408_v48  ;;  %v2421_v3 = vld [vmem:[%s3112_s4 + $0x38] sm:$0xff]  }
 0x32e   : > { %2208 = vmatpush3.bf16.msra.mxu0 %v2421_v3  ;;  %v2434_v3 = vld [vmem:[%s3118_s10 + $0x8] sm:$0xff]  }
 0x32f   : > { %v1328_v52 = vmul.f32 %v1327_v51, %v939_v30  ;;  %2293 = vmatprep.subr.bf16.mxu0 %v2556_v23 }
 0x331   : > { %v1331_v55 = vpack.c.bf16 %v1328_v52, %v1328_v52  ;;  %2122 = vst.msk [vmem:[%s2877_s15 + $0x18] sm:$0xff] %vm989_vm3, %v1328_v52  ;;  %s2465_s15 = scalar_lea.vmem %s2464_s24, 1024 }
 0x332   : > { %p2467_p1 = scmp.lt.s32.totalorder %s2465_s15, %s2459_s22 }
 0x333   : > { %2290 = vmatmul.mubr.msk.bf16.vlgmr.msra.gmra.mrb[24].mxu1 %vm989_vm3, %v1331_v55 }
 0x334   : > { %2216 = vmatpush3.bf16.msra.mxu1 %v2410_v54  ;;  %v2431_v54 = vld [vmem:[%s3116_s8] sm:$0xff]   ;;  %p2468_p2 = por %p2467_p1, %p2466_p0 }
 0x335   : > { %2217 = vmatprep.subr.bf16.mxu1 %v2412_v57 }
 0x336   : > { %p2469_p3 = pnand %p2468_p2, %p2462_p13 }
 0x338   : > { %2218 = vmatpush3.bf16.msra.mxu1 %v2414_v59  ;;  %v2157_v59 = vld [vmem:[%s3114_s6] ss:$0 sm:$0xff] }
 0x339   : > { %2219 = vmatprep.subr.bf16.mxu1 %v2416_v61  ;;  %v2158_v61 = vld [vmem:[%s3115_s7] ss:$0 sm:$0xff] }
 0x33c   : > { %2220 = vmatpush3.bf16.msra.mxu1 %v2418_v63 }
 0x33d   : > { %2221 = vmatprep.subr.bf16.mxu1 %v2420_v2  ;;  %v2433_v2 = vld [vmem:[%s3118_s10] sm:$0xff]  }
 0x340   : > { %2222 = vmatpush3.bf16.msra.mxu1 %v2422_v4  ;;  %v2435_v4 = vld [vmem:[%s3118_s10 + $0x10] sm:$0xff]  }
 0x341   : > { %2223 = vmatprep.subr.bf16.mxu1 %v2423_v5  ;;  %v2436_v5 = vld [vmem:[%s3118_s10 + $0x18] sm:$0xff]  }
 0x344   : > { %2224 = vmatpush3.bf16.msra.mxu1 %v2424_v6  ;;  %v2159_v6 = vld [vmem:[%s3117_s9] ss:$0 sm:$0xff] }
 0x345   : > { %2225 = vmatprep.subr.bf16.mxu1 %v2425_v8 }
 0x348   : > { %2226 = vmatpush3.bf16.msra.mxu1 %v2426_v10 }
 0x349   : > { %2227 = vmatprep.subr.bf16.mxu1 %v2427_v11 }
 0x34c   : > { %2228 = vmatpush3.bf16.msra.mxu1 %v2428_v12 }
 0x34d   : > { %2229 = vmatprep.subr.bf16.mxu1 %v2429_v13 }
 0x350   : > { %2230 = vmatpush3.bf16.msra.mxu1 %v2430_v14 }
 0x351   : > { %2301 = vmatprep.subr.bf16.mxu1 %v2556_v23 }
 0x3ee   : > { %v1045_v15 = vpop.f32.mrb[12].mxu1 }
 0x3ef   : > { %v2255_v17 = vpop.f32.mrb[13].mxu1  ;;  %v1383_v25 = vpack.c.bf16 %v1045_v15, %v1045_v15 }
 0x3f0   : > { %v1048_v18 = vpop.f32.mrb[14].mxu1 }
 0x3f1   : > { %v2256_v19 = vpop.f32.mrb[15].mxu1 }
 0x3f6   : > { %v1156_v21 = vpop.f32.mrb[16].mxu1 }
 0x3f7   : > { %v1384_v22 = vpack.c.bf16 %v1156_v21, %v1156_v21  ;;  %v2267_v24 = vpop.f32.mrb[17].mxu1 }
 0x3f8   : > { %v1159_v26 = vpop.f32.mrb[18].mxu1 }
 0x3f9   : > { %v2268_v27 = vpop.f32.mrb[19].mxu1  ;;  %1682 = vmatprep.mubr.bf16.mxu0 %v1384_v22 }
 0x3fa   : > { %1683 = vmatmul.mubr.bf16.vlgmr.msra.gmra.mrb[28].mxu0 %v1383_v25 }
 0x3fb   : > { %2297 = vmatprep.mubr.msk.bf16.mxu0 %vm2557_vm1, %v2556_v23  ;;  %2294 = vmatpush3.bf16.msra.mxu0 %v2431_v54 }
 0x3fc   : > { %2295 = vmatprep.subr.bf16.mxu0 %v2556_v23 }
 0x3fe   : > { %v1264_v28 = vpop.f32.mrb[20].mxu1 }
 0x3ff   : > { %v2279_v30 = vpop.f32.mrb[21].mxu1  ;;  %v1385_v36 = vpack.c.bf16 %v1264_v28, %v1264_v28 }
 0x400   : > { %v1267_v31 = vpop.f32.mrb[22].mxu1 }
 0x401   : > { %v2280_v32 = vpop.f32.mrb[23].mxu1 }
 0x406   : > { %v1372_v33 = vpop.f32.mrb[24].mxu1 }
 0x407   : > { %v1386_v34 = vpack.c.bf16 %v1372_v33, %v1372_v33  ;;  %v2291_v35 = vpop.f32.mrb[25].mxu1 }
 0x408   : > { %v1375_v53 = vpop.f32.mrb[26].mxu1 }
 0x409   : > { %v2292_v37 = vpop.f32.mrb[27].mxu1  ;;  %1722 = vmatprep.mubr.bf16.mxu1 %v1386_v34  ;;  %v2558_v53 = vmov -1.0  }
 0x40a   : > { %1723 = vmatmul.mubr.bf16.vlgmr.msra.gmra.mrb[28].mxu1 %v1385_v36 }
 0x40b   : > { %2309 = vmatprep.mubr.msk.bf16.mxu1 %vm2557_vm1, %v2556_v23  ;;  %2302 = vmatpush3.bf16.msra.mxu1 %v2433_v2 }
 0x40c   : > { %2303 = vmatprep.subr.bf16.mxu1 %v2556_v23 }
 0x40f   : > { %2304 = vmatpush3.bf16.msra.mxu1 %v2434_v3 }
 0x410   : > { %2305 = vmatprep.subr.bf16.mxu1 %v2556_v23 }
 0x413   : > { %2306 = vmatpush3.bf16.msra.mxu1 %v2435_v4 }
 0x414   : > { %2307 = vmatprep.subr.bf16.mxu1 %v2556_v23 }
 0x417   : > { %2308 = vmatpush3.bf16.msra.mxu1 %v2436_v5 }
 0x4cd   : > { %v2209_v20 = vpop.f32.mrb[28].mxu0 }
 0x4ce   : > { %v2210_v38 = vpop.f32.mrb[29].mxu0 }
 0x4cf   : > { %v2211_v1 = vadd.f32 %v2210_v38, %v2209_v20  ;;  %v2212_v39 = vpop.f32.mrb[30].mxu0 }
 0x4d0   : > { %v2213_v40 = vpop.f32.mrb[31].mxu0 }
 0x4d1   : > { %v1685_v44 = vadd.f32 %v2211_v1, %v2124_v41 }
 0x4dd   : > { %v2231_v42 = vpop.f32.mrb[28].mxu1 }
 0x4de   : > { %v2232_v43 = vpop.f32.mrb[29].mxu1 }
 0x4df   : > { %v2233_v45 = vadd.f32 %v2232_v43, %v2231_v42  ;;  %v2234_v46 = vpop.f32.mrb[30].mxu1 }
 0x4e0   : > { %v2235_v29 = vpop.f32.mrb[31].mxu1 }
 0x4e1   : > { %v1725_v9 = vadd.f32 %v2233_v45, %v1685_v44 }
 0x4e3   : > { %v2984_v16 = vadd.f32 %v1725_v9, %v2707_v7  ;;  %v2432_v7 = vld [vmem:[%s3116_s8 + $0x8] sm:$0xff]  }
 0x4e4   : > { %2296 = vmatpush3.bf16.msra.mxu0 %v2432_v7 }
 0x4e5   : > { %v1731_v47 = vsel %vm676_vm0, %v2984_v16, 0.0 }
 0x4e6   : > { %1732 = vadd.xlane.f32.xlu0 %v1731_v47 }
 0x573   : > { %v1733_v48 = vpop.xlane.xlu0 %1732 }
 0x574   : > { %v1735_v49 = vmul.f32 0.03125, %v1733_v48 }
 0x576   : > { %v1736_v50 = vsub.f32 %v2984_v16, %v1735_v49 }
 0x578   : > { %v1737_v51 = vmul.f32 %v1736_v50, %v1736_v50 }
 0x57a   : > { %v1738_v52 = vsel %vm676_vm0, %v1737_v51, 0.0 }
 0x57b   : > { %1739 = vadd.xlane.f32.xlu1 %v1738_v52 }
 0x608   : > { %v1740_v55 = vpop.xlane.xlu1 %1739 }
 0x609   : > { %v1741_v56 = vmul.f32 0.03125, %v1740_v55 }
 0x60b   : > { %v1742_v57 = vadd.f32 1e-05, %v1741_v56 }
 0x60d   : > { %2453 = vrsqrt.f32 %v1742_v57 }
 0x617   : > { %v2454_v58 = vpop.eup %2453 }
 0x618   : > { %v1744_v60 = vmul.f32 %v2454_v58, %v1736_v50 }
 0x61a   : > { %v1752_v62 = vmul.f32 %v2157_v59, %v1744_v60 }
 0x61c   : > { %v1760_v63 = vadd.f32 %v2158_v61, %v1752_v62 }
 0x61e   : > { %v1761_v0 = vpack.c.bf16 %v1760_v63, %v1760_v63 }
 0x620   : > { %2298 = vmatmul.mubr.msk.bf16.vlgmr.msra.gmra.mrb[32].mxu0 %vm676_vm0, %v1761_v0 }
 0x6f3   : > { %v1822_v8 = vpop.f32.mrb[32].mxu0 }
 0x6f4   : > { %v1823_v10 = vadd.f32 %v2159_v6, %v1822_v8  ;;  %v2299_v11 = vpop.f32.mrb[33].mxu0 }
 0x6f5   : > { %v1825_v12 = vpop.f32.mrb[34].mxu0 }
 0x6f6   : > { %v1829_v13 = vmul.f32 0.70710677, %v1823_v10  ;;  %v2300_v14 = vpop.f32.mrb[35].mxu0  ;;  %v1828_v38 = vmul.f32 0.5, %v1823_v10 }
 0x6f8   : > { %v1832_v15 = vand.u32 2147483647, %v1829_v13  ;;  %vm1830_vm4 = vcmp.ge.f32.partialorder %v1829_v13, 0.0 }
 0x6f9   : > { %v1831_v37 = vsel %vm1830_vm4, 1.0, %v2558_v53 }
 0x6fa   : > { %v1833_v17 = vmul.f32 0.3275911, %v1832_v15  ;;  %v1846_v23 = vmul.f32 %v1832_v15, %v1832_v15 }
 0x6fc   : > { %v1834_v18 = vadd.f32 1.0, %v1833_v17  ;;  %v1847_v21 = vsub.f32 0.0, %v1846_v23 }
 0x6fe   : > { %2455 = vrcp.f32 %v1834_v18  ;;  %v1848_v25 = vmul.f32 1.442695, %v1847_v21 }
 0x700   : > { %2457 = vpow2.f32 %v1848_v25 }
 0x708   : > { %v2456_v19 = vpop.eup %2455 }
 0x709   : > { %v1837_v22 = vmul.f32 1.0614054, %v2456_v19 }
 0x70a   : > { %v2458_v34 = vpop.eup %2457 }
 0x70b   : > { %v1838_v24 = vadd.f32 -1.4531521, %v1837_v22 }
 0x70d   : > { %v1839_v26 = vmul.f32 %v2456_v19, %v1838_v24 }
 0x70f   : > { %v1840_v27 = vadd.f32 1.4214138, %v1839_v26 }
 0x711   : > { %v1841_v28 = vmul.f32 %v2456_v19, %v1840_v27 }
 0x713   : > { %v1842_v30 = vadd.f32 -0.28449672, %v1841_v28 }
 0x715   : > { %v1843_v31 = vmul.f32 %v2456_v19, %v1842_v30 }
 0x717   : > { %v1844_v32 = vadd.f32 0.2548296, %v1843_v31 }
 0x719   : > { %v1845_v33 = vmul.f32 %v2456_v19, %v1844_v32 }
 0x71b   : > { %v1850_v35 = vmul.f32 %v2458_v34, %v1845_v33 }
 0x71d   : > { %v1851_v36 = vsub.f32 1.0, %v1850_v35 }
 0x71f   : > { %v1852_v20 = vmul.f32 %v1851_v36, %v1831_v37 }
 0x721   : > { %v1853_v1 = vadd.f32 1.0, %v1852_v20 }
 0x723   : > { %v1854_v39 = vmul.f32 %v1853_v1, %v1828_v38 }
 0x725   : > { %v1855_v40 = vpack.c.bf16 %v1854_v39, %v1854_v39 }
 0x727   : > { %2310 = vmatmul.mubr.msk.bf16.vlgmr.msra.gmra.mrb[32].mxu1 %vm1895_vm5, %v1855_v40 }
 0x728   : > { %2472 = shalt.err (!%p2469_p3)
}
 0x729   : > { %s2473_s30 = scalar_lea.hbm %s3029_s25, 512  ;;  %s2477_s14 = scalar_lea.hbm %s3121_s13, 1024 }
 0x72a   : > { %p2474_p4 = scmp.ne.s32.totalorder %s3029_s25, %s2473_s30  ;;  %p2478_p9 = scmp.lt.u32.totalorder %s3029_s25, %s3121_s13 }
 0x72b   : > { %p2479_p10 = scmp.lt.u32.totalorder %s2477_s14, %s2473_s30  ;;  %p2481_p12 = scmp.lt.u32.totalorder %s2473_s30, %s3029_s25 }
 0x72c   : > { %p2475_p7 = pnand %p2474_p4, %p2671_p5 }
 0x72d   : > { %p2480_p11 = por %p2479_p10, %p2478_p9 }
 0x72e   : > { %p2476_p8 = pneg %p2475_p7 }
 0x72f   : > { %p2482_p13 = por %p2481_p12, %p2480_p11 }
 0x731   : > { %p2483_p0 = pnand %p2482_p13, %p2476_p8 }
 0x733   : > { %2486 = shalt.err (!%p2483_p0)
}
 0x734   : > { %s2560_s22 = smov 128   ;;  %s2561_s24 = smov 8   ;;  %v2163_v41 = vld [vmem:[%s3119_s11] ss:$0 sm:$0xff] }
 0x735   : > { %2314 = dma.vmem_to_hbm [thread:$0]  (%p2671_p5), %s3024_s20, 512, %s3029_s25, %s1947_s19, %s2560_s22, %s2560_s22, %s2561_s24  }
 0x736   : > { %s2083_s15 = sshll.u32 %s2870_s27, 3  ;;  %s2171_s30 = sshll.u32 %s2654_s29, 7 }
 0x737   : > { %s448_s14 = scalar_lea.vmem [#allocation4], %s2083_s15  ;;  %s3064_s20 = scalar_lea.hbm %s3120_s12, %s2171_s30 }
 0x738   : > { %s1960_s21 = sshll.u32 %s448_s14, 4  ;;  %s1942_s29 = scalar_lea.sflag [#allocation5], %s2870_s27  ;;  %s3066_s21 = int_to_ptr.vmem [resolvable:$true] %s1960_s21 }
 0x739   : > { %s2487_s25 = scalar_lea.vmem %s3066_s21, 128  ;;  %s2562_s19 = smov [#allocation4]  }
 0x73a   : > { %p2488_p1 = scmp.ne.s32.totalorder %s3066_s21, %s2487_s25  ;;  %s2491_s22 = sshll.u32 %s2562_s19, 4  ;;  %s2492_s22 = int_to_ptr.vmem [resolvable:$false] %s2491_s22 }
 0x73b   : > { %s2493_s24 = scalar_lea.vmem %s2492_s22, 256  ;;  %p2494_p4 = scmp.lt.s32.totalorder %s3066_s21, %s2492_s22 }
 0x73c   : > { %p2489_p2 = pnand %p2488_p1, %p2671_p5  ;;  %p2495_p7 = scmp.lt.s32.totalorder %s2493_s24, %s2487_s25 }
 0x73e   : > { %p2490_p3 = pneg %p2489_p2  ;;  %p2496_p8 = por %p2495_p7, %p2494_p4 }
 0x740   : > { %p2497_p9 = pnand %p2496_p8, %p2490_p3 }
 0x7fa   : > { %v1933_v42 = vpop.f32.mrb[32].mxu1 }
 0x7fb   : > { %v1934_v43 = vadd.f32 %v2163_v41, %v1933_v42  ;;  %v2311_v44 = vpop.f32.mrb[33].mxu1 }
 0x7fc   : > { %v1936_v45 = vpop.f32.mrb[34].mxu1 }
 0x7fd   : > { %v1939_v46 = vadd.f32 %v1934_v43, %v2984_v16  ;;  %v2312_v29 = vpop.f32.mrb[35].mxu1 }
 0x7ff   : > { %1940 = vst.msk [vmem:[%s448_s14] sm:$0xff] %vm676_vm0, %v1939_v46 }
 0x800   : > { %2500 = shalt.err (!%p2497_p9)
}
 0x801   : > { %s2501_s0 = scalar_lea.hbm %s3064_s20, 128  ;;  %s2505_s16 = scalar_lea.hbm %s3120_s12, 256 }
 0x802   : > { %p2502_p10 = scmp.ne.s32.totalorder %s3064_s20, %s2501_s0  ;;  %p2506_p13 = scmp.lt.u32.totalorder %s3064_s20, %s3120_s12 }
 0x803   : > { %p2507_p0 = scmp.lt.u32.totalorder %s2505_s16, %s2501_s0  ;;  %p2509_p2 = scmp.lt.u32.totalorder %s2501_s0, %s3064_s20 }
 0x804   : > { %p2503_p11 = pnand %p2502_p10, %p2671_p5 }
 0x805   : > { %p2508_p1 = por %p2507_p0, %p2506_p13 }
 0x806   : > { %p2504_p12 = pneg %p2503_p11 }
 0x807   : > { %p2510_p3 = por %p2509_p2, %p2508_p1 }
 0x809   : > { %p2511_p4 = pnand %p2510_p3, %p2504_p12 }
 0x80b   : > { %2514 = shalt.err (!%p2511_p4)
}
 0x80c   : > { %2313 = dma.vmem_to_hbm [thread:$0]  (%p2671_p5), %s3066_s21, 128, %s3064_s20, %s1942_s29  }
 0x80d PF: > { %s3136_s14 = sld [smem:[#allocation10_spill]]  ;;  %p2324_p7 = scmp.ge.s32.totalorder %s2553_s28, 2 }
 0x80f   : > { %p2318_p8 = pnand %p2324_p7, %p2675_p6 }
 0x813   : > { %s1988_s25 = sand.u32 1, %s3136_s14  }
 0x814   : > { %s1989_s19 = scalar_lea.sflag [#allocation5], %s1988_s25 }
 0x815   : > { %2532 = dma.done.wait (!%p2318_p8), %s1989_s19, 128  }
 0x816   : > { %2534 = vsyncadd (!%p2318_p8), %s1989_s19, 4294967168  ;;  %s1998_s22 = scalar_lea.sflag [#allocation7], %s1988_s25 }
 0x817   : > { %2536 = dma.done.wait (!%p2318_p8), %s1998_s22, 512  }
 0x818   : > { %2538 = vsyncadd (!%p2318_p8), %s1998_s22, 4294966784  ;;  %s3138_s28 = sld [smem:[#allocation12_spill]]  ;;  %s3139_s18 = sld [smem:[#allocation11_spill]] }
 0x819   : > { %s3140_s27 = sld [smem:[#allocation13_spill]]  ;;  %s3141_s25 = smov %s2545_s26 }
 0x81e   : > { %p27_p5 = scmp.ge.s32.totalorder %s3138_s28, 4   ;;  %s3142_s26 = smov %s3139_s18 }
 0x820   :  { %29 = sbr.rel (!%p27_p5) target bundleno = 7 (0x7), region = 128 }
 0x827   :  { %2003 = vsyncpa [#allocation5], 1 }
 0x828   :  { %2005 = vsyncpa [#allocation5 + $0x1], 1 }
 0x829   :  { %2006 = vsyncpa [#allocation7], 1 }
 0x82a   :  { %2008 = vsyncpa [#allocation7 + $0x1], 1 }

</bundles_post_ra>
